<compile_context>
chip_gen: v5e
topology: v5e:2x2
jax: 0.10.0
libtpu: 0.0.40
codegen_flags: <defaults>
</compile_context>

<pallas_src>
import functools

import jax
import jax.numpy as jnp
import numpy as np
from jax.experimental import pallas as pl
from jax.experimental.pallas import tpu as pltpu


def _dyn_conv_kernel(x_ref, fc1w_ref, fc1b_ref, fc2w_ref, fc2b_ref,
                     wbank_ref, bbank_ref, o_ref,
                     xp_ref, wmix_ref, bmix_ref, *rest,
                     KH, KW, padding, use_im2col):
    """Fused attention + CondConv conv for one (sample, row-tile) grid step.

    x_ref    : (H, W, C)      unpadded NHWC sample (resident across row tiles)
    fc1w_ref : (C, K)         attention fc1 weight (pre-transposed)
    fc1b_ref : (1, K)
    fc2w_ref : (K, K)         attention fc2 weight (pre-transposed)
    fc2b_ref : (1, K)
    wbank_ref: (K, O, R)      bf16 expert weight bank, R = KH*KW*C (HWC order)
    bbank_ref: (K, O, 1)      f32 expert bias bank
    o_ref    : (O, Th*Wo)     lane-dense NCHW-flat output tile
    xp_ref   : (Hp, Wp, C)    f32 scratch: zero-padded sample (built at t == 0)
    wmix_ref : (O, R)         bf16 scratch: attention-mixed weight (t == 0)
    bmix_ref : (O, 1)         f32 scratch: attention-mixed bias (t == 0)
    rest     : ((R, Th*Wo) bf16 im2col patch scratch,) iff use_im2col
    """
    H, W, C = x_ref.shape
    K = wbank_ref.shape[0]
    O, R = wmix_ref.shape
    Hp, Wp, _ = xp_ref.shape
    Wo = Wp - KW + 1
    TW = o_ref.shape[1]
    Th = TW // Wo
    t = pl.program_id(1)

    # ---- per-sample setup, hoisted out of the row-tile loop (the t axis is
    # "arbitrary", so these scratches persist across tiles on one core) ----
    @pl.when(t == 0)
    def _per_sample_setup():
        x = x_ref[...].astype(jnp.float32)

        # Zero padding folded into VMEM: no HBM round-trip for a padded copy.
        if padding > 0:
            xp_ref[...] = jnp.zeros_like(xp_ref)
            xp_ref[padding:padding + H, padding:padding + W, :] = x
        else:
            xp_ref[...] = x

        # Fused attention: GAP -> fc1 -> relu -> fc2 -> softmax over K experts.
        colsum = jnp.sum(x, axis=0)                                        # (W, C)
        pooled = jnp.sum(colsum, axis=0, keepdims=True) * (1.0 / (H * W))  # (1, C)
        h1 = jnp.dot(pooled, fc1w_ref[...],
                     preferred_element_type=jnp.float32) + fc1b_ref[...]
        h1 = jnp.maximum(h1, 0.0)
        h2 = jnp.dot(h1, fc2w_ref[...],
                     preferred_element_type=jnp.float32) + fc2b_ref[...]
        m = jnp.max(h2, axis=1, keepdims=True)
        e = jnp.exp(h2 - m)
        att = e / jnp.sum(e, axis=1, keepdims=True)                        # (1, K)

        # Mix the expert bank ONCE per sample (f32 accumulate, bf16 store).
        w_acc = att[:, 0:1] * wbank_ref[0].astype(jnp.float32)             # (O, R)
        b_acc = att[:, 0:1] * bbank_ref[0]                                 # (O, 1)
        for k in range(1, K):
            a_k = att[:, k:k + 1]
            w_acc = w_acc + a_k * wbank_ref[k].astype(jnp.float32)
            b_acc = b_acc + a_k * bbank_ref[k]
        wmix_ref[...] = w_acc.astype(wmix_ref.dtype)
        bmix_ref[...] = b_acc

    # ---- per-tile convolution ----
    row0 = t * Th
    if use_im2col:
        # Lane-dense (R, Th*Wo) im2col patch: full-width unmasked row stores and
        # MXU-native RHS orientation; one deep-contraction matmul per tile.
        patch_ref = rest[0]
        for dy in range(KH):                      # static unrolled taps
            for dx in range(KW):
                tap = xp_ref[pl.ds(row0 + dy, Th), dx:dx + Wo, :]          # (Th,Wo,C)
                col = (dy * KW + dx) * C
                tap_t = jnp.transpose(tap.reshape(Th * Wo, C))             # (C,Th*Wo)
                patch_ref[col:col + C, :] = tap_t.astype(patch_ref.dtype)
        out = jax.lax.dot_general(
            wmix_ref[...], patch_ref[...],
            dimension_numbers=(((1,), (0,)), ((), ())),
            preferred_element_type=jnp.float32)                            # (O,Th*Wo)
    else:
        # No im2col: accumulate KH*KW matmuls, each contracting over C.  Used when
        # C % 128 == 0 (contraction already MXU-deep, saves the big patch scratch)
        # or when C is tiny (staging a lane-starved patch is pure overhead).
        out = None
        for dy in range(KH):
            for dx in range(KW):
                tap = xp_ref[pl.ds(row0 + dy, Th), dx:dx + Wo, :]          # (Th,Wo,C)
                tap2 = tap.reshape(Th * Wo, C).astype(jnp.bfloat16)
                col = (dy * KW + dx) * C
                part = jax.lax.dot_general(
                    wmix_ref[:, col:col + C], tap2,
                    dimension_numbers=(((1,), (1,)), ((), ())),
                    preferred_element_type=jnp.float32)                    # (O,Th*Wo)
                out = part if out is None else out + part

    o_ref[...] = (out + bmix_ref[...]).astype(o_ref.dtype)


def _pick_row_tile(Ho, Wo, per_row_bytes, budget_bytes):
    """Largest divisor Th of Ho whose tile-varying VMEM fits `budget_bytes`,
    under the hard constraint that the output block's lane dim (Th*Wo) is a
    multiple of 128 or the full Ho*Wo.  Prefers MXU-width (256) aligned tiles."""
    valid = [th for th in range(1, Ho + 1)
             if Ho % th == 0 and ((th * Wo) % 128 == 0 or th == Ho)]
    fits = [th for th in valid if th * per_row_bytes <= budget_bytes]
    pool = fits if fits else [min(valid)]     # fallback: smallest LEGAL tile
    return max(pool, key=lambda th: ((th * Wo) % 256 == 0, th))


def dynamic_conv2d_forward(x_nchw, params, *, stride=1, padding=0):
    """Forward pass of Dynamic_conv2d (groups=1, dilation=1, stride=1, bias=True)."""
    assert stride == 1  # TODO(synk): stride>1 / dilation>1 / groups>1 not implemented
    weight = params["weight"]          # (K, O, Cin, KH, KW)  -- torch layout
    bias = params["bias"]              # (K, O)
    fc1_w, fc1_b = params["fc1_w"], params["fc1_b"]   # (K, Cin), (K,)
    fc2_w, fc2_b = params["fc2_w"], params["fc2_b"]   # (K, K),   (K,)

    B, C, H, W = x_nchw.shape
    Kmix, O, Cin, KH, KW = weight.shape
    assert Cin == C

    # NCHW -> NHWC (C on lanes).
    # TODO(synk): for very small C, pad C up to a lane-friendly width (or keep W
    # on the lane axis) so vregs / DMA rows aren't lane-starved.
    x = jnp.transpose(x_nchw, (0, 2, 3, 1))

    # Static expert banks; bf16 weight bank (halves HBM traffic + VMEM residency).
    # (K, O, C, KH, KW) -> (K, O, KH, KW, C) -> (K, O, KH*KW*C)
    R = KH * KW * Cin
    wbank = jnp.transpose(weight, (0, 1, 3, 4, 2)).reshape(Kmix, O, R)
    wbank = wbank.astype(jnp.bfloat16)
    bbank = bias.reshape(Kmix, O, 1).astype(jnp.float32)

    Hp, Wp = H + 2 * padding, W + 2 * padding
    Ho, Wo = Hp - KH + 1, Wp - KW + 1

    # im2col only when the per-tap channel contraction alone would underuse the
    # MXU and C is big enough that staging a patch is worth it.
    use_im2col = (C % 128 != 0) and (C >= 32)

    # ---- VMEM budget: size the row tile against the REAL resident set ----
    try:
        vmem_cap = int(pltpu.get_tpu_info().vmem_capacity_bytes)
    except Exception:
        vmem_cap = 64 * 1024 * 1024
    vmem_limit = min((vmem_cap * 3) // 4, 96 * 1024 * 1024)  # ~48MiB v7x, 96MiB v5e/v6e

    fixed_bytes = (Hp * Wp * C * 4              # padded-sample scratch
                   + 2 * H * W * C * 4          # input block (double-buffered)
                   + 2 * Kmix * O * R * 2       # bf16 expert weight bank (dbuf)
                   + 2 * Kmix * O * 4           # bias bank (dbuf)
                   + O * R * 2 + O * 4          # mixed weight / bias scratch
                   + (1 << 20))                 # fc params + compiler slack
    per_row_bytes = 2 * O * Wo * 4              # double-buffered f32 output rows
    per_row_bytes += O * Wo * 4                 # f32 accumulator headroom
    if use_im2col:
        per_row_bytes += Wo * R * 2             # bf16 im2col patch rows
    budget = max(vmem_limit - fixed_bytes, per_row_bytes)
    Th = _pick_row_tile(Ho, Wo, per_row_bytes, budget)
    T = Ho // Th

    scratch = [pltpu.VMEM((Hp, Wp, C), jnp.float32),     # padded sample
               pltpu.VMEM((O, R), jnp.bfloat16),         # mixed weight
               pltpu.VMEM((O, 1), jnp.float32)]          # mixed bias
    if use_im2col:
        scratch.append(pltpu.VMEM((R, Th * Wo), jnp.bfloat16))

    kernel = functools.partial(_dyn_conv_kernel, KH=KH, KW=KW,
                               padding=padding, use_im2col=use_im2col)

    # Grid (B, T): per-sample setup runs once at t == 0, so t must stay
    # "arbitrary"; b stays "parallel" for megacore sharding (B >= 2).
    # TODO(synk): for B == 1 split T across cores instead (re-run setup per core).
    # TODO(synk): for very large H*W*C stage only a (Th+KH-1)-row halo per tile
    # via manual DMA instead of keeping the whole padded sample VMEM-resident.
    out_flat = pl.pallas_call(
        kernel,
        out_shape=jax.ShapeDtypeStruct((B, O, Ho * Wo), jnp.float32),
        grid=(B, T),
        in_specs=[pl.BlockSpec((None, H, W, C), lambda b, t: (b, 0, 0, 0)),
                  pl.BlockSpec((C, Kmix), lambda b, t: (0, 0)),
                  pl.BlockSpec((1, Kmix), lambda b, t: (0, 0)),
                  pl.BlockSpec((Kmix, Kmix), lambda b, t: (0, 0)),
                  pl.BlockSpec((1, Kmix), lambda b, t: (0, 0)),
                  pl.BlockSpec((Kmix, O, R), lambda b, t: (0, 0, 0)),
                  pl.BlockSpec((Kmix, O, 1), lambda b, t: (0, 0, 0))],
        out_specs=pl.BlockSpec((None, O, Th * Wo), lambda b, t: (b, 0, t)),
        scratch_shapes=scratch,
        compiler_params=pltpu.CompilerParams(
            dimension_semantics=("parallel", "arbitrary"),
            vmem_limit_bytes=int(vmem_limit)),
    )(x, fc1_w.T, fc1_b.reshape(1, Kmix), fc2_w.T, fc2_b.reshape(1, Kmix),
      wbank, bbank)

    # (B, O, Ho*Wo) is already NCHW-flat: just reshape, no transpose pass.
    return out_flat.reshape(B, O, Ho, Wo)


def _reference_forward(x_nchw, params, *, padding):
    """Pure-JAX reference mirroring the PyTorch module."""
    weight, bias = params["weight"], params["bias"]
    B, C, H, W = x_nchw.shape
    K, O, Cin, KH, KW = weight.shape
    pooled = jnp.mean(x_nchw, axis=(2, 3))                       # (B, C)
    h1 = jax.nn.relu(pooled @ params["fc1_w"].T + params["fc1_b"])
    h2 = h1 @ params["fc2_w"].T + params["fc2_b"]
    att = jax.nn.softmax(h2, axis=1)                             # (B, K)
    agg_w = (att @ weight.reshape(K, -1)).reshape(B, O, Cin, KH, KW)
    agg_b = att @ bias                                           # (B, O)
    outs = []
    for b in range(B):
        o = jax.lax.conv_general_dilated(
            x_nchw[b:b + 1], agg_w[b], window_strides=(1, 1),
            padding=[(padding, padding), (padding, padding)],
            dimension_numbers=("NCHW", "OIHW", "NCHW"))
        outs.append(o + agg_b[b].reshape(1, O, 1, 1))
    return jnp.concatenate(outs, axis=0)


if __name__ == "__main__":
    key = jax.random.PRNGKey(0)
    B, C, H, W = 2, 4, 16, 16          # batch, in_planes, spatial
    O, KH, Kmix = 8, 3, 4              # out_planes, kernel_size, K experts
    padding = 1

    ks = jax.random.split(key, 7)
    params = {
        "weight": jax.random.normal(ks[0], (Kmix, O, C, KH, KH), jnp.float32) * 0.1,
        "bias":   jax.random.normal(ks[1], (Kmix, O), jnp.float32) * 0.1,
        "fc1_w":  jax.random.normal(ks[2], (Kmix, C), jnp.float32) * 0.5,
        "fc1_b":  jax.random.normal(ks[3], (Kmix,), jnp.float32) * 0.1,
        "fc2_w":  jax.random.normal(ks[4], (Kmix, Kmix), jnp.float32) * 0.5,
        "fc2_b":  jax.random.normal(ks[5], (Kmix,), jnp.float32) * 0.1,
    }
    x = jax.random.normal(ks[6], (B, C, H, W), jnp.float32)

    out = dynamic_conv2d_forward(x, params, stride=1, padding=padding)
    out = jax.block_until_ready(out)

    ref = _reference_forward(x, params, padding=padding)
    assert out.shape == ref.shape == (B, O, H, W)
    np.testing.assert_allclose(np.asarray(out), np.asarray(ref), rtol=2e-2, atol=2e-2)
    print("KERNEL_OK")
</pallas_src>

<mosaic_0001>
module attributes {stable_mosaic.version = 11 : i64} {
  func.func @_dyn_conv_kernel(%arg0: i32, %arg1: i32, %arg2: memref<1x16x16x4xf32, #tpu.memory_space<vmem>>, %arg3: memref<4x4xf32, #tpu.memory_space<vmem>>, %arg4: memref<1x4xf32, #tpu.memory_space<vmem>>, %arg5: memref<4x4xf32, #tpu.memory_space<vmem>>, %arg6: memref<1x4xf32, #tpu.memory_space<vmem>>, %arg7: memref<4x8x36xbf16, #tpu.memory_space<vmem>>, %arg8: memref<4x8x1xf32, #tpu.memory_space<vmem>>, %arg9: memref<1x8x256xf32, #tpu.memory_space<vmem>>, %arg10: memref<18x18x4xf32, #tpu.memory_space<vmem>>, %arg11: memref<8x36xbf16, #tpu.memory_space<vmem>>, %arg12: memref<8x1xf32, #tpu.memory_space<vmem>>) attributes {dimension_semantics = [#tpu.dimension_semantics<parallel>, #tpu.dimension_semantics<arbitrary>], iteration_bounds = array<i64: 2, 1>, scalar_prefetch = 0 : i64, scratch_operands = 3 : i64, tpu.core_type = #tpu.core_type<tc>, window_params = [{transform_indices = @transform_0, window_bounds = array<i64: 1, 16, 16, 4>}, {pipeline_mode = #tpu.pipeline_mode<synchronous>, transform_indices = @transform_1, window_bounds = array<i64: 4, 4>}, {pipeline_mode = #tpu.pipeline_mode<synchronous>, transform_indices = @transform_2, window_bounds = array<i64: 1, 4>}, {pipeline_mode = #tpu.pipeline_mode<synchronous>, transform_indices = @transform_3, window_bounds = array<i64: 4, 4>}, {pipeline_mode = #tpu.pipeline_mode<synchronous>, transform_indices = @transform_4, window_bounds = array<i64: 1, 4>}, {pipeline_mode = #tpu.pipeline_mode<synchronous>, transform_indices = @transform_5, window_bounds = array<i64: 4, 8, 36>}, {pipeline_mode = #tpu.pipeline_mode<synchronous>, transform_indices = @transform_6, window_bounds = array<i64: 4, 8, 1>}, {transform_indices = @transform_7, window_bounds = array<i64: 1, 8, 256>}]} {
    %c0_i32 = arith.constant 0 : i32
    %0 = arith.cmpi eq, %arg1, %c0_i32 : i32
    %1 = arith.extui %0 : i1 to i32
    %c0_i32_0 = arith.constant 0 : i32
    %2 = arith.cmpi ne, %1, %c0_i32_0 : i32
    scf.if %2 {
      %c0_46 = arith.constant 0 : index
      %c0_47 = arith.constant 0 : index
      %c0_48 = arith.constant 0 : index
      %c0_49 = arith.constant 0 : index
      %81 = vector.load %arg2[%c0_46, %c0_47, %c0_48, %c0_49] : memref<1x16x16x4xf32, #tpu.memory_space<vmem>>, vector<1x16x16x4xf32>
      %82 = vector.shape_cast %81 : vector<1x16x16x4xf32> to vector<16x16x4xf32>
      %cst_50 = arith.constant 0.000000e+00 : f32
      %83 = vector.broadcast %cst_50 : f32 to vector<18x18x4xf32>
      %c0_51 = arith.constant 0 : index
      %c0_52 = arith.constant 0 : index
      %c0_53 = arith.constant 0 : index
      %84 = vector.load %arg10[%c0_51, %c0_52, %c0_53] : memref<18x18x4xf32, #tpu.memory_space<vmem>>, vector<18x18x4xf32>
      tpu.vector_store %arg10[%c0_51, %c0_52, %c0_53], %83 {strides = array<i32>} : memref<18x18x4xf32, #tpu.memory_space<vmem>>, vector<18x18x4xf32>,
      %c1_54 = arith.constant 1 : index
      %c1_55 = arith.constant 1 : index
      %c0_56 = arith.constant 0 : index
      %85 = vector.load %arg10[%c1_54, %c1_55, %c0_56] : memref<18x18x4xf32, #tpu.memory_space<vmem>>, vector<16x16x4xf32>
      tpu.vector_store %arg10[%c1_54, %c1_55, %c0_56], %82 {strides = array<i32>} : memref<18x18x4xf32, #tpu.memory_space<vmem>>, vector<16x16x4xf32>,
      %cst_57 = arith.constant dense<0.000000e+00> : vector<16x4xf32>
      %86 = vector.multi_reduction <add>, %82, %cst_57 [0] : vector<16x16x4xf32> to vector<16x4xf32>
      %cst_58 = arith.constant dense<0.000000e+00> : vector<4xf32>
      %87 = vector.multi_reduction <add>, %86, %cst_58 [0] : vector<16x4xf32> to vector<4xf32>
      %88 = vector.shape_cast %87 : vector<4xf32> to vector<1x4xf32>
      %cst_59 = arith.constant 3.906250e-03 : f32
      %89 = vector.broadcast %cst_59 : f32 to vector<1x4xf32>
      %90 = arith.mulf %88, %89 : vector<1x4xf32>
      %c0_60 = arith.constant 0 : index
      %c0_61 = arith.constant 0 : index
      %91 = vector.load %arg3[%c0_60, %c0_61] : memref<4x4xf32, #tpu.memory_space<vmem>>, vector<4x4xf32>
      %cst_62 = arith.constant dense<0.000000e+00> : vector<1x4xf32>
      %92 = tpu.matmul %90, %91, %cst_62 {dimension_numbers = #tpu.dot_dimension_numbers<[1], [0], [0], [1], [0, 0, 1, 1], [], []>} : vector<1x4xf32>, vector<4x4xf32>, vector<1x4xf32> -> vector<1x4xf32>
      %c0_63 = arith.constant 0 : index
      %c0_64 = arith.constant 0 : index
      %93 = vector.load %arg4[%c0_63, %c0_64] : memref<1x4xf32, #tpu.memory_space<vmem>>, vector<1x4xf32>
      %94 = arith.addf %92, %93 : vector<1x4xf32>
      %cst_65 = arith.constant 0.000000e+00 : f32
      %95 = vector.broadcast %cst_65 : f32 to vector<1x4xf32>
      %96 = arith.maximumf %94, %95 : vector<1x4xf32>
      %c0_66 = arith.constant 0 : index
      %c0_67 = arith.constant 0 : index
      %97 = vector.load %arg5[%c0_66, %c0_67] : memref<4x4xf32, #tpu.memory_space<vmem>>, vector<4x4xf32>
      %cst_68 = arith.constant dense<0.000000e+00> : vector<1x4xf32>
      %98 = tpu.matmul %96, %97, %cst_68 {dimension_numbers = #tpu.dot_dimension_numbers<[1], [0], [0], [1], [0, 0, 1, 1], [], []>} : vector<1x4xf32>, vector<4x4xf32>, vector<1x4xf32> -> vector<1x4xf32>
      %c0_69 = arith.constant 0 : index
      %c0_70 = arith.constant 0 : index
      %99 = vector.load %arg6[%c0_69, %c0_70] : memref<1x4xf32, #tpu.memory_space<vmem>>, vector<1x4xf32>
      %100 = arith.addf %98, %99 : vector<1x4xf32>
      %cst_71 = arith.constant dense<0xFF800000> : vector<1xf32>
      %101 = vector.multi_reduction <maximumf>, %100, %cst_71 [1] : vector<1x4xf32> to vector<1xf32>
      %102 = vector.shape_cast %101 : vector<1xf32> to vector<1x1xf32>
      %103 = vector.broadcast %102 : vector<1x1xf32> to vector<1x4xf32>
      %104 = arith.subf %100, %103 : vector<1x4xf32>
      %105 = math.exp %104 : vector<1x4xf32>
      %cst_72 = arith.constant dense<0.000000e+00> : vector<1xf32>
      %106 = vector.multi_reduction <add>, %105, %cst_72 [1] : vector<1x4xf32> to vector<1xf32>
      %107 = vector.shape_cast %106 : vector<1xf32> to vector<1x1xf32>
      %108 = vector.broadcast %107 : vector<1x1xf32> to vector<1x4xf32>
      %109 = arith.divf %105, %108 : vector<1x4xf32>
      %110 = vector.extract_strided_slice %109 {offsets = [0, 0], sizes = [1, 1], strides = [1, 1]} : vector<1x4xf32> to vector<1x1xf32>
      %c0_73 = arith.constant 0 : index
      %c0_74 = arith.constant 0 : index
      %c0_75 = arith.constant 0 : index
      %111 = vector.load %arg7[%c0_73, %c0_74, %c0_75] : memref<4x8x36xbf16, #tpu.memory_space<vmem>>, vector<1x8x36xbf16>
      %112 = vector.shape_cast %111 : vector<1x8x36xbf16> to vector<8x36xbf16>
      %113 = arith.extf %112 : vector<8x36xbf16> to vector<8x36xf32>
      %114 = vector.broadcast %110 : vector<1x1xf32> to vector<8x36xf32>
      %115 = arith.mulf %114, %113 : vector<8x36xf32>
      %116 = vector.extract_strided_slice %109 {offsets = [0, 0], sizes = [1, 1], strides = [1, 1]} : vector<1x4xf32> to vector<1x1xf32>
      %c0_76 = arith.constant 0 : index
      %c0_77 = arith.constant 0 : index
      %c0_78 = arith.constant 0 : index
      %117 = vector.load %arg8[%c0_76, %c0_77, %c0_78] : memref<4x8x1xf32, #tpu.memory_space<vmem>>, vector<1x8x1xf32>
      %118 = vector.shape_cast %117 : vector<1x8x1xf32> to vector<8x1xf32>
      %119 = vector.broadcast %116 : vector<1x1xf32> to vector<8x1xf32>
      %120 = arith.mulf %119, %118 : vector<8x1xf32>
      %121 = vector.extract_strided_slice %109 {offsets = [0, 1], sizes = [1, 1], strides = [1, 1]} : vector<1x4xf32> to vector<1x1xf32>
      %c1_79 = arith.constant 1 : index
      %c0_80 = arith.constant 0 : index
      %c0_81 = arith.constant 0 : index
      %122 = vector.load %arg7[%c1_79, %c0_80, %c0_81] : memref<4x8x36xbf16, #tpu.memory_space<vmem>>, vector<1x8x36xbf16>
      %123 = vector.shape_cast %122 : vector<1x8x36xbf16> to vector<8x36xbf16>
      %124 = arith.extf %123 : vector<8x36xbf16> to vector<8x36xf32>
      %125 = vector.broadcast %121 : vector<1x1xf32> to vector<8x36xf32>
      %126 = arith.mulf %125, %124 : vector<8x36xf32>
      %127 = arith.addf %115, %126 : vector<8x36xf32>
      %c1_82 = arith.constant 1 : index
      %c0_83 = arith.constant 0 : index
      %c0_84 = arith.constant 0 : index
      %128 = vector.load %arg8[%c1_82, %c0_83, %c0_84] : memref<4x8x1xf32, #tpu.memory_space<vmem>>, vector<1x8x1xf32>
      %129 = vector.shape_cast %128 : vector<1x8x1xf32> to vector<8x1xf32>
      %130 = vector.broadcast %121 : vector<1x1xf32> to vector<8x1xf32>
      %131 = arith.mulf %130, %129 : vector<8x1xf32>
      %132 = arith.addf %120, %131 : vector<8x1xf32>
      %133 = vector.extract_strided_slice %109 {offsets = [0, 2], sizes = [1, 1], strides = [1, 1]} : vector<1x4xf32> to vector<1x1xf32>
      %c2_85 = arith.constant 2 : index
      %c0_86 = arith.constant 0 : index
      %c0_87 = arith.constant 0 : index
      %134 = vector.load %arg7[%c2_85, %c0_86, %c0_87] : memref<4x8x36xbf16, #tpu.memory_space<vmem>>, vector<1x8x36xbf16>
      %135 = vector.shape_cast %134 : vector<1x8x36xbf16> to vector<8x36xbf16>
      %136 = arith.extf %135 : vector<8x36xbf16> to vector<8x36xf32>
      %137 = vector.broadcast %133 : vector<1x1xf32> to vector<8x36xf32>
      %138 = arith.mulf %137, %136 : vector<8x36xf32>
      %139 = arith.addf %127, %138 : vector<8x36xf32>
      %c2_88 = arith.constant 2 : index
      %c0_89 = arith.constant 0 : index
      %c0_90 = arith.constant 0 : index
      %140 = vector.load %arg8[%c2_88, %c0_89, %c0_90] : memref<4x8x1xf32, #tpu.memory_space<vmem>>, vector<1x8x1xf32>
      %141 = vector.shape_cast %140 : vector<1x8x1xf32> to vector<8x1xf32>
      %142 = vector.broadcast %133 : vector<1x1xf32> to vector<8x1xf32>
      %143 = arith.mulf %142, %141 : vector<8x1xf32>
      %144 = arith.addf %132, %143 : vector<8x1xf32>
      %145 = vector.extract_strided_slice %109 {offsets = [0, 3], sizes = [1, 1], strides = [1, 1]} : vector<1x4xf32> to vector<1x1xf32>
      %c3 = arith.constant 3 : index
      %c0_91 = arith.constant 0 : index
      %c0_92 = arith.constant 0 : index
      %146 = vector.load %arg7[%c3, %c0_91, %c0_92] : memref<4x8x36xbf16, #tpu.memory_space<vmem>>, vector<1x8x36xbf16>
      %147 = vector.shape_cast %146 : vector<1x8x36xbf16> to vector<8x36xbf16>
      %148 = arith.extf %147 : vector<8x36xbf16> to vector<8x36xf32>
      %149 = vector.broadcast %145 : vector<1x1xf32> to vector<8x36xf32>
      %150 = arith.mulf %149, %148 : vector<8x36xf32>
      %151 = arith.addf %139, %150 : vector<8x36xf32>
      %c3_93 = arith.constant 3 : index
      %c0_94 = arith.constant 0 : index
      %c0_95 = arith.constant 0 : index
      %152 = vector.load %arg8[%c3_93, %c0_94, %c0_95] : memref<4x8x1xf32, #tpu.memory_space<vmem>>, vector<1x8x1xf32>
      %153 = vector.shape_cast %152 : vector<1x8x1xf32> to vector<8x1xf32>
      %154 = vector.broadcast %145 : vector<1x1xf32> to vector<8x1xf32>
      %155 = arith.mulf %154, %153 : vector<8x1xf32>
      %156 = arith.addf %144, %155 : vector<8x1xf32>
      %157 = arith.truncf %151 : vector<8x36xf32> to vector<8x36xbf16>
      %c0_96 = arith.constant 0 : index
      %c0_97 = arith.constant 0 : index
      %158 = vector.load %arg11[%c0_96, %c0_97] : memref<8x36xbf16, #tpu.memory_space<vmem>>, vector<8x36xbf16>
      tpu.vector_store %arg11[%c0_96, %c0_97], %157 {strides = array<i32>} : memref<8x36xbf16, #tpu.memory_space<vmem>>, vector<8x36xbf16>,
      %c0_98 = arith.constant 0 : index
      %c0_99 = arith.constant 0 : index
      %159 = vector.load %arg12[%c0_98, %c0_99] : memref<8x1xf32, #tpu.memory_space<vmem>>, vector<8x1xf32>
      tpu.vector_store %arg12[%c0_98, %c0_99], %156 {strides = array<i32>} : memref<8x1xf32, #tpu.memory_space<vmem>>, vector<8x1xf32>,
    } else {
    }
    %c16_i32 = arith.constant 16 : i32
    %3 = arith.muli %arg1, %c16_i32 : i32
    %c0_i32_1 = arith.constant 0 : i32
    %4 = arith.addi %3, %c0_i32_1 : i32
    %5 = arith.index_cast %4 : i32 to index
    %c0 = arith.constant 0 : index
    %c0_2 = arith.constant 0 : index
    %6 = vector.load %arg10[%5, %c0, %c0_2] : memref<18x18x4xf32, #tpu.memory_space<vmem>>, vector<16x16x4xf32>
    %7 = vector.shape_cast %6 : vector<16x16x4xf32> to vector<256x4xf32>
    %8 = arith.truncf %7 : vector<256x4xf32> to vector<256x4xbf16>
    %c0_3 = arith.constant 0 : index
    %c0_4 = arith.constant 0 : index
    %9 = vector.load %arg11[%c0_3, %c0_4] : memref<8x36xbf16, #tpu.memory_space<vmem>>, vector<8x4xbf16>
    %cst = arith.constant dense<0.000000e+00> : vector<8x256xf32>
    %10 = tpu.matmul %9, %8, %cst {dimension_numbers = #tpu.dot_dimension_numbers<[1], [1], [0], [0], [0, 0, 1, 0], [], []>} : vector<8x4xbf16>, vector<256x4xbf16>, vector<8x256xf32> -> vector<8x256xf32>
    %c0_i32_5 = arith.constant 0 : i32
    %11 = arith.addi %3, %c0_i32_5 : i32
    %12 = arith.index_cast %11 : i32 to index
    %c1 = arith.constant 1 : index
    %c0_6 = arith.constant 0 : index
    %13 = vector.load %arg10[%12, %c1, %c0_6] : memref<18x18x4xf32, #tpu.memory_space<vmem>>, vector<16x16x4xf32>
    %14 = vector.shape_cast %13 : vector<16x16x4xf32> to vector<256x4xf32>
    %15 = arith.truncf %14 : vector<256x4xf32> to vector<256x4xbf16>
    %c0_7 = arith.constant 0 : index
    %c4 = arith.constant 4 : index
    %16 = vector.load %arg11[%c0_7, %c4] : memref<8x36xbf16, #tpu.memory_space<vmem>>, vector<8x4xbf16>
    %cst_8 = arith.constant dense<0.000000e+00> : vector<8x256xf32>
    %17 = tpu.matmul %16, %15, %cst_8 {dimension_numbers = #tpu.dot_dimension_numbers<[1], [1], [0], [0], [0, 0, 1, 0], [], []>} : vector<8x4xbf16>, vector<256x4xbf16>, vector<8x256xf32> -> vector<8x256xf32>
    %18 = arith.addf %10, %17 : vector<8x256xf32>
    %c0_i32_9 = arith.constant 0 : i32
    %19 = arith.addi %3, %c0_i32_9 : i32
    %20 = arith.index_cast %19 : i32 to index
    %c2 = arith.constant 2 : index
    %c0_10 = arith.constant 0 : index
    %21 = vector.load %arg10[%20, %c2, %c0_10] : memref<18x18x4xf32, #tpu.memory_space<vmem>>, vector<16x16x4xf32>
    %22 = vector.shape_cast %21 : vector<16x16x4xf32> to vector<256x4xf32>
    %23 = arith.truncf %22 : vector<256x4xf32> to vector<256x4xbf16>
    %c0_11 = arith.constant 0 : index
    %c8 = arith.constant 8 : index
    %24 = vector.load %arg11[%c0_11, %c8] : memref<8x36xbf16, #tpu.memory_space<vmem>>, vector<8x4xbf16>
    %cst_12 = arith.constant dense<0.000000e+00> : vector<8x256xf32>
    %25 = tpu.matmul %24, %23, %cst_12 {dimension_numbers = #tpu.dot_dimension_numbers<[1], [1], [0], [0], [0, 0, 1, 0], [], []>} : vector<8x4xbf16>, vector<256x4xbf16>, vector<8x256xf32> -> vector<8x256xf32>
    %26 = arith.addf %18, %25 : vector<8x256xf32>
    %c1_i32 = arith.constant 1 : i32
    %27 = arith.addi %3, %c1_i32 : i32
    %28 = arith.index_cast %27 : i32 to index
    %c0_13 = arith.constant 0 : index
    %c0_14 = arith.constant 0 : index
    %29 = vector.load %arg10[%28, %c0_13, %c0_14] : memref<18x18x4xf32, #tpu.memory_space<vmem>>, vector<16x16x4xf32>
    %30 = vector.shape_cast %29 : vector<16x16x4xf32> to vector<256x4xf32>
    %31 = arith.truncf %30 : vector<256x4xf32> to vector<256x4xbf16>
    %c0_15 = arith.constant 0 : index
    %c12 = arith.constant 12 : index
    %32 = vector.load %arg11[%c0_15, %c12] : memref<8x36xbf16, #tpu.memory_space<vmem>>, vector<8x4xbf16>
    %cst_16 = arith.constant dense<0.000000e+00> : vector<8x256xf32>
    %33 = tpu.matmul %32, %31, %cst_16 {dimension_numbers = #tpu.dot_dimension_numbers<[1], [1], [0], [0], [0, 0, 1, 0], [], []>} : vector<8x4xbf16>, vector<256x4xbf16>, vector<8x256xf32> -> vector<8x256xf32>
    %34 = arith.addf %26, %33 : vector<8x256xf32>
    %c1_i32_17 = arith.constant 1 : i32
    %35 = arith.addi %3, %c1_i32_17 : i32
    %36 = arith.index_cast %35 : i32 to index
    %c1_18 = arith.constant 1 : index
    %c0_19 = arith.constant 0 : index
    %37 = vector.load %arg10[%36, %c1_18, %c0_19] : memref<18x18x4xf32, #tpu.memory_space<vmem>>, vector<16x16x4xf32>
    %38 = vector.shape_cast %37 : vector<16x16x4xf32> to vector<256x4xf32>
    %39 = arith.truncf %38 : vector<256x4xf32> to vector<256x4xbf16>
    %c0_20 = arith.constant 0 : index
    %c16 = arith.constant 16 : index
    %40 = vector.load %arg11[%c0_20, %c16] : memref<8x36xbf16, #tpu.memory_space<vmem>>, vector<8x4xbf16>
    %cst_21 = arith.constant dense<0.000000e+00> : vector<8x256xf32>
    %41 = tpu.matmul %40, %39, %cst_21 {dimension_numbers = #tpu.dot_dimension_numbers<[1], [1], [0], [0], [0, 0, 1, 0], [], []>} : vector<8x4xbf16>, vector<256x4xbf16>, vector<8x256xf32> -> vector<8x256xf32>
    %42 = arith.addf %34, %41 : vector<8x256xf32>
    %c1_i32_22 = arith.constant 1 : i32
    %43 = arith.addi %3, %c1_i32_22 : i32
    %44 = arith.index_cast %43 : i32 to index
    %c2_23 = arith.constant 2 : index
    %c0_24 = arith.constant 0 : index
    %45 = vector.load %arg10[%44, %c2_23, %c0_24] : memref<18x18x4xf32, #tpu.memory_space<vmem>>, vector<16x16x4xf32>
    %46 = vector.shape_cast %45 : vector<16x16x4xf32> to vector<256x4xf32>
    %47 = arith.truncf %46 : vector<256x4xf32> to vector<256x4xbf16>
    %c0_25 = arith.constant 0 : index
    %c20 = arith.constant 20 : index
    %48 = vector.load %arg11[%c0_25, %c20] : memref<8x36xbf16, #tpu.memory_space<vmem>>, vector<8x4xbf16>
    %cst_26 = arith.constant dense<0.000000e+00> : vector<8x256xf32>
    %49 = tpu.matmul %48, %47, %cst_26 {dimension_numbers = #tpu.dot_dimension_numbers<[1], [1], [0], [0], [0, 0, 1, 0], [], []>} : vector<8x4xbf16>, vector<256x4xbf16>, vector<8x256xf32> -> vector<8x256xf32>
    %50 = arith.addf %42, %49 : vector<8x256xf32>
    %c2_i32 = arith.constant 2 : i32
    %51 = arith.addi %3, %c2_i32 : i32
    %52 = arith.index_cast %51 : i32 to index
    %c0_27 = arith.constant 0 : index
    %c0_28 = arith.constant 0 : index
    %53 = vector.load %arg10[%52, %c0_27, %c0_28] : memref<18x18x4xf32, #tpu.memory_space<vmem>>, vector<16x16x4xf32>
    %54 = vector.shape_cast %53 : vector<16x16x4xf32> to vector<256x4xf32>
    %55 = arith.truncf %54 : vector<256x4xf32> to vector<256x4xbf16>
    %c0_29 = arith.constant 0 : index
    %c24 = arith.constant 24 : index
    %56 = vector.load %arg11[%c0_29, %c24] : memref<8x36xbf16, #tpu.memory_space<vmem>>, vector<8x4xbf16>
    %cst_30 = arith.constant dense<0.000000e+00> : vector<8x256xf32>
    %57 = tpu.matmul %56, %55, %cst_30 {dimension_numbers = #tpu.dot_dimension_numbers<[1], [1], [0], [0], [0, 0, 1, 0], [], []>} : vector<8x4xbf16>, vector<256x4xbf16>, vector<8x256xf32> -> vector<8x256xf32>
    %58 = arith.addf %50, %57 : vector<8x256xf32>
    %c2_i32_31 = arith.constant 2 : i32
    %59 = arith.addi %3, %c2_i32_31 : i32
    %60 = arith.index_cast %59 : i32 to index
    %c1_32 = arith.constant 1 : index
    %c0_33 = arith.constant 0 : index
    %61 = vector.load %arg10[%60, %c1_32, %c0_33] : memref<18x18x4xf32, #tpu.memory_space<vmem>>, vector<16x16x4xf32>
    %62 = vector.shape_cast %61 : vector<16x16x4xf32> to vector<256x4xf32>
    %63 = arith.truncf %62 : vector<256x4xf32> to vector<256x4xbf16>
    %c0_34 = arith.constant 0 : index
    %c28 = arith.constant 28 : index
    %64 = vector.load %arg11[%c0_34, %c28] : memref<8x36xbf16, #tpu.memory_space<vmem>>, vector<8x4xbf16>
    %cst_35 = arith.constant dense<0.000000e+00> : vector<8x256xf32>
    %65 = tpu.matmul %64, %63, %cst_35 {dimension_numbers = #tpu.dot_dimension_numbers<[1], [1], [0], [0], [0, 0, 1, 0], [], []>} : vector<8x4xbf16>, vector<256x4xbf16>, vector<8x256xf32> -> vector<8x256xf32>
    %66 = arith.addf %58, %65 : vector<8x256xf32>
    %c2_i32_36 = arith.constant 2 : i32
    %67 = arith.addi %3, %c2_i32_36 : i32
    %68 = arith.index_cast %67 : i32 to index
    %c2_37 = arith.constant 2 : index
    %c0_38 = arith.constant 0 : index
    %69 = vector.load %arg10[%68, %c2_37, %c0_38] : memref<18x18x4xf32, #tpu.memory_space<vmem>>, vector<16x16x4xf32>
    %70 = vector.shape_cast %69 : vector<16x16x4xf32> to vector<256x4xf32>
    %71 = arith.truncf %70 : vector<256x4xf32> to vector<256x4xbf16>
    %c0_39 = arith.constant 0 : index
    %c32 = arith.constant 32 : index
    %72 = vector.load %arg11[%c0_39, %c32] : memref<8x36xbf16, #tpu.memory_space<vmem>>, vector<8x4xbf16>
    %cst_40 = arith.constant dense<0.000000e+00> : vector<8x256xf32>
    %73 = tpu.matmul %72, %71, %cst_40 {dimension_numbers = #tpu.dot_dimension_numbers<[1], [1], [0], [0], [0, 0, 1, 0], [], []>} : vector<8x4xbf16>, vector<256x4xbf16>, vector<8x256xf32> -> vector<8x256xf32>
    %74 = arith.addf %66, %73 : vector<8x256xf32>
    %c0_41 = arith.constant 0 : index
    %c0_42 = arith.constant 0 : index
    %75 = vector.load %arg12[%c0_41, %c0_42] : memref<8x1xf32, #tpu.memory_space<vmem>>, vector<8x1xf32>
    %76 = vector.broadcast %75 : vector<8x1xf32> to vector<8x256xf32>
    %77 = arith.addf %74, %76 : vector<8x256xf32>
    %c0_43 = arith.constant 0 : index
    %c0_44 = arith.constant 0 : index
    %c0_45 = arith.constant 0 : index
    %78 = vector.load %arg9[%c0_43, %c0_44, %c0_45] : memref<1x8x256xf32, #tpu.memory_space<vmem>>, vector<1x8x256xf32>
    %79 = vector.shape_cast %78 : vector<1x8x256xf32> to vector<8x256xf32>
    %80 = vector.shape_cast %77 : vector<8x256xf32> to vector<1x8x256xf32>
    tpu.vector_store %arg9[%c0_43, %c0_44, %c0_45], %80 {strides = array<i32>} : memref<1x8x256xf32, #tpu.memory_space<vmem>>, vector<1x8x256xf32>,
    return
  }
  func.func @transform_0(%arg0: i32, %arg1: i32) -> (i32, i32, i32, i32) {
    %c0_i32 = arith.constant 0 : i32
    %c0_i32_0 = arith.constant 0 : i32
    %c0_i32_1 = arith.constant 0 : i32
    %c0_i32_2 = arith.constant 0 : i32
    return %arg0, %c0_i32, %c0_i32_0, %c0_i32_1 : i32, i32, i32, i32
  }
  func.func @transform_1(%arg0: i32, %arg1: i32) -> (i32, i32) {
    %c0_i32 = arith.constant 0 : i32
    %c0_i32_0 = arith.constant 0 : i32
    %c0_i32_1 = arith.constant 0 : i32
    return %c0_i32, %c0_i32_0 : i32, i32
  }
  func.func @transform_2(%arg0: i32, %arg1: i32) -> (i32, i32) {
    %c0_i32 = arith.constant 0 : i32
    %c0_i32_0 = arith.constant 0 : i32
    %c0_i32_1 = arith.constant 0 : i32
    return %c0_i32, %c0_i32_0 : i32, i32
  }
  func.func @transform_3(%arg0: i32, %arg1: i32) -> (i32, i32) {
    %c0_i32 = arith.constant 0 : i32
    %c0_i32_0 = arith.constant 0 : i32
    %c0_i32_1 = arith.constant 0 : i32
    return %c0_i32, %c0_i32_0 : i32, i32
  }
  func.func @transform_4(%arg0: i32, %arg1: i32) -> (i32, i32) {
    %c0_i32 = arith.constant 0 : i32
    %c0_i32_0 = arith.constant 0 : i32
    %c0_i32_1 = arith.constant 0 : i32
    return %c0_i32, %c0_i32_0 : i32, i32
  }
  func.func @transform_5(%arg0: i32, %arg1: i32) -> (i32, i32, i32) {
    %c0_i32 = arith.constant 0 : i32
    %c0_i32_0 = arith.constant 0 : i32
    %c0_i32_1 = arith.constant 0 : i32
    %c0_i32_2 = arith.constant 0 : i32
    return %c0_i32, %c0_i32_0, %c0_i32_1 : i32, i32, i32
  }
  func.func @transform_6(%arg0: i32, %arg1: i32) -> (i32, i32, i32) {
    %c0_i32 = arith.constant 0 : i32
    %c0_i32_0 = arith.constant 0 : i32
    %c0_i32_1 = arith.constant 0 : i32
    %c0_i32_2 = arith.constant 0 : i32
    return %c0_i32, %c0_i32_0, %c0_i32_1 : i32, i32, i32
  }
  func.func @transform_7(%arg0: i32, %arg1: i32) -> (i32, i32, i32) {
    %c0_i32 = arith.constant 0 : i32
    %c0_i32_0 = arith.constant 0 : i32
    return %arg0, %c0_i32, %arg1 : i32, i32, i32
  }
}

</mosaic_0001>

<bundles_post_ra>
// kernel: tpu_custom_call.1
= control target key start
LH: loop header
LB: loop body
LE: loop exit
PB: predicated region body
PF: predicated region fallthrough
CT: control target
= control target key end

     0   :  { %12 = vsyncpa [#allocation6], 0  ;;  %s3133_s0 = inlined_call_operand.vmem [shape: f32[2,16,16,4], index: 0, kind: input, shape index: {}]   ;;  %s3134_s1 = inlined_call_operand.vmem [shape: f32[4,4], index: 1, kind: input, shape index: {}]   ;;  %s3135_s2 = inlined_call_operand.vmem [shape: f32[1,4], index: 2, kind: input, shape index: {}]   ;;  %s3136_s3 = inlined_call_operand.vmem [shape: f32[4,4], index: 3, kind: input, shape index: {}]   ;;  %s3137_s4 = inlined_call_operand.vmem [shape: f32[1,4], index: 4, kind: input, shape index: {}]   ;;  %s3138_s5 = inlined_call_operand.vmem [shape: bf16[4,8,36], index: 5, kind: input, shape index: {}]   ;;  %s3139_s6 = inlined_call_operand.vmem [shape: f32[4,8,1], index: 6, kind: input, shape index: {}]   ;;  %s3140_s7 = inlined_call_operand.hbm [shape: f32[2,8,256], index: 7, kind: output, shape index: {}]  }
   0x1   :  { %14 = vsyncpa [#allocation6 + $0x1], 0  ;;  %s2386_s24 = smov 0   ;;  %s2388_s25 = smov 0  }
   0x2   :  { %s2390_s26 = smov 0   ;;  %s2392_s27 = smov 0  }
   0x3   :  { %s2394_s28 = smov 0   ;;  %s2396_s29 = smov 0  }
   0x4 LB: > { %s1931_s30 = sadd.s32 4294967295, %s2328_s29   ;;  %s1932_s8 = sadd.s32 4294967294, %s2328_s29   ;;  %s2328_s29 = sphi %s2396_s29, %s20_s29   ;;  %s2324_s28 = sphi %s2394_s28, %s3147_s28   ;;  %s2320_s27 = sphi %s2392_s27, %s3146_s27   ;;  %s2316_s26 = sphi %s2390_s26, %s3145_s26   ;;  %s2312_s25 = sphi %s2388_s25, %s3144_s25   ;;  %s2308_s24 = sphi %s2386_s24, %s3143_s24  }
   0x5   : > { %s32_s9 = sadd.s32 1, %s2324_s28  ;;  %s193_s10 = sadd.s32 1, %s2316_s26 }
   0x6   : > { %p34_p0 = scmp.ge.s32.totalorder %s32_s9, 2  ;;  %p203_p1 = scmp.ne.s32.totalorder %s2316_s26, %s2312_s25 }
   0x7   : > { %p204_p2 = scmp.eq.s32.totalorder %s1931_s30, 1  ;;  %p209_p3 = scmp.ne.s32.totalorder %s2312_s25, %s2308_s24 }
   0x8   : > { %s3149_s9 = smov (%p34_p0, %s32_s9), 0  ;;  %p210_p5 = scmp.eq.s32.totalorder %s1932_s8, 1 }
   0x9   : > { %p2426_p4 = por %p204_p2, %p203_p1  ;;  %s188_s12 = ssub.s32 %s2324_s28, %s3149_s9 }
   0xa   : > { %p1935_p6 = scmp.ge.s32.totalorder %s2328_s29, 1  ;;  %p191_p7 = scmp.eq.s32.totalorder %s188_s12, 0 }
   0xb   : > { %p2433_p8 = por %p210_p5, %p209_p3  ;;  %p254_p9 = scmp.lt.s32.totalorder %s2328_s29, 3 }
   0xc   : > { %s2439_s14 = scalar_select %p191_p7, %s2316_s26, %s193_s10  }
   0xd   : > { %p255_p10 = pnand %p1935_p6, %p254_p9 }
   0xe   : > { %p286_p11 = scmp.lt.s32.totalorder (!%p255_p10), %s2320_s27, 1  ;;  %s2331_s15 = smov (!%p255_p10), 125  }
   0xf   : > { %258 = sbr.rel (%p255_p10) target bundleno = 1216 (0x4c0), region = 48  ;;  %s2332_s16 = smov (!%p255_p10), 127  }
  0x10   : > { %s2334_s20 = smov (!%p255_p10), 112   ;;  %s2336_s22 = smov (!%p255_p10), 124  }
  0x11   : > { %s2337_s8 = smov (!%p255_p10), 104   ;;  %s2338_s10 = smov (!%p255_p10), 1  }
  0x12   : > { %s2339_s12 = smov (!%p255_p10), 116   ;;  %s2343_s23 = smov (!%p255_p10), 100  }
  0x14   : > { %v489_v0 = vld [vmem:[%s3134_s1] sm:$0xf]  ;;  %vm494_vm0 = vcmask 1043456   ;;  %vm328_vm1 = vcmask 31744   ;;  %v2330_v1 = vmov 0.0   ;;  %s287_s17 = scalar_select %p286_p11, %s2320_s27, 1 }
  0x15   : > { %1939 = vmatpush.msk.msra.mxu0 %vm494_vm0, %v489_v0  ;;  %357 = vst.msk [vmem:[#allocation2 + $0xd8] sm:$0xff] %vm328_vm1, %v2330_v1  ;;  %vm331_vm2 = vcmask 25600   ;;  %vm547_vm3 = vcmask 24576   ;;  %vm649_vm8 = vcmask 289792   ;;  %vm651_vm9 = vcmask 7168  }
  0x16   : > { %358 = vst.msk [vmem:[#allocation2 + $0xe0] sm:$0xff] %vm328_vm1, %v2330_v1  ;;  %s2164_s18 = sshll.u32 %s287_s17, 8  ;;  %s2333_s17 = smov 126  }
  0x17   : > { %359 = vst.msk [vmem:[#allocation2 + $0xe8] sm:$0x3] %vm331_vm2, %v2330_v1  ;;  %s2458_s21 = scalar_lea.vmem %s3133_s0, %s2164_s18 }
  0x18   : > { %360 = vst.msk [vmem:[#allocation2 + $0xf0] sm:$0xff] %vm328_vm1, %v2330_v1  ;;  %v2463_v2 = vld [vmem:[%s2458_s21] sm:$0xff]  ;;  %v2466_v3 = vld [vmem:[%s2458_s21 + $0x10] sm:$0xff]  ;;  %v2490_v11 = vld [vmem:[%s2458_s21 + $0x8] sm:$0xff] }
  0x19   : > { %361 = vst.msk [vmem:[#allocation2 + $0xf8] sm:$0xff] %vm328_vm1, %v2330_v1  ;;  %v2471_v4 = vld [vmem:[%s2458_s21 + $0x20] sm:$0xff]  ;;  %v417_v5 = vsel %vm328_vm1, %v2463_v2, 0.0  ;;  %v418_v6 = vsel %vm328_vm1, %v2466_v3, 0.0  ;;  %v2480_v7 = vld [vmem:[%s2458_s21 + $0x30] sm:$0xff]  ;;  %v2502_v15 = vld [vmem:[%s2458_s21 + $0x18] sm:$0xff] }
  0x1a   : > { %362 = vst.msk [vmem:[#allocation2 + $0x100] sm:$0x3] %vm331_vm2, %v2330_v1  ;;  %v2483_v8 = vld [vmem:[%s2458_s21 + $0x40] sm:$0xff]  ;;  %v419_v9 = vadd.f32 %v418_v6, %v417_v5  ;;  %v420_v10 = vsel %vm328_vm1, %v2471_v4, 0.0  ;;  %v422_v12 = vsel %vm328_vm1, %v2480_v7, 0.0  ;;  %v2497_v13 = vld [vmem:[%s2458_s21 + $0x50] sm:$0xff] }
  0x1b   : > { %363 = vst.msk [vmem:[#allocation2 + $0x108] sm:$0xff] %vm328_vm1, %v2330_v1  ;;  %v424_v16 = vsel %vm328_vm1, %v2483_v8, 0.0  ;;  %v2509_v17 = vld [vmem:[%s2458_s21 + $0x60] sm:$0xff]  ;;  %v448_v19 = vsel %vm328_vm1, %v2490_v11, 0.0  ;;  %v2516_v20 = vld [vmem:[%s2458_s21 + $0x28] sm:$0xff]  ;;  %v426_v21 = vsel %vm328_vm1, %v2497_v13, 0.0 }
  0x1c   : > { %364 = vst.msk [vmem:[#allocation2 + $0x110] sm:$0xff] %vm328_vm1, %v2330_v1  ;;  %v421_v14 = vadd.f32 %v420_v10, %v419_v9  ;;  %v2523_v22 = vld [vmem:[%s2458_s21 + $0x38] sm:$0xff]  ;;  %v2526_v23 = vld [vmem:[%s2458_s21 + $0x70] sm:$0xff]  ;;  %v449_v25 = vsel %vm328_vm1, %v2502_v15, 0.0  ;;  %v2533_v26 = vld [vmem:[%s2458_s21 + $0x48] sm:$0xff]  ;;  %v428_v27 = vsel %vm328_vm1, %v2509_v17, 0.0 }
  0x1d   : > { %365 = vst.msk [vmem:[#allocation2 + $0x118] sm:$0x3] %vm331_vm2, %v2330_v1  ;;  %v450_v28 = vadd.f32 %v449_v25, %v448_v19  ;;  %v312_v29 = vld [vmem:[%s2458_s21 + $0x80] sm:$0xff]  ;;  %v451_v31 = vsel %vm328_vm1, %v2516_v20, 0.0  ;;  %v2545_v32 = vld [vmem:[%s2458_s21 + $0x58] sm:$0xff]  ;;  %v430_v33 = vsel %vm328_vm1, %v2526_v23, 0.0 }
  0x1e   : > { %366 = vst.msk [vmem:[#allocation2 + $0x120] sm:$0xff] %vm328_vm1, %v2330_v1  ;;  %v423_v18 = vadd.f32 %v422_v12, %v421_v14  ;;  %v453_v35 = vsel %vm328_vm1, %v2523_v22, 0.0  ;;  %v314_v36 = vld [vmem:[%s2458_s21 + $0x90] sm:$0xff]  ;;  %v455_v38 = vsel %vm328_vm1, %v2533_v26, 0.0  ;;  %v2559_v39 = vld [vmem:[%s2458_s21 + $0x68] sm:$0xff]  ;;  %v432_v40 = vsel %vm328_vm1, %v312_v29, 0.0 }
  0x1f   : > { %367 = vst.msk [vmem:[#allocation2 + $0x128] sm:$0xff] %vm328_vm1, %v2330_v1  ;;  %v452_v34 = vadd.f32 %v451_v31, %v450_v28  ;;  %v316_v42 = vld [vmem:[%s2458_s21 + $0xa0] sm:$0xff]  ;;  %v457_v44 = vsel %vm328_vm1, %v2545_v32, 0.0  ;;  %v2570_v45 = vld [vmem:[%s2458_s21 + $0x78] sm:$0xff]  ;;  %v434_v46 = vsel %vm328_vm1, %v314_v36, 0.0  ;;  %v318_v48 = vld [vmem:[%s2458_s21 + $0xb0] sm:$0xff] }
  0x20   : > { %368 = vst.msk [vmem:[#allocation2 + $0x130] sm:$0x3] %vm331_vm2, %v2330_v1  ;;  %v425_v24 = vadd.f32 %v424_v16, %v423_v18  ;;  %v459_v50 = vsel %vm328_vm1, %v2559_v39, 0.0  ;;  %v313_v51 = vld [vmem:[%s2458_s21 + $0x88] sm:$0xff]  ;;  %v436_v52 = vsel %vm328_vm1, %v316_v42, 0.0  ;;  %v320_v54 = vld [vmem:[%s2458_s21 + $0xc0] sm:$0xff] }
  0x21   : > { %369 = vst.msk [vmem:[#allocation2 + $0x138] sm:$0xff] %vm328_vm1, %v2330_v1  ;;  %v454_v41 = vadd.f32 %v453_v35, %v452_v34  ;;  %v461_v56 = vsel %vm328_vm1, %v2570_v45, 0.0  ;;  %v315_v57 = vld [vmem:[%s2458_s21 + $0x98] sm:$0xff]  ;;  %v438_v58 = vsel %vm328_vm1, %v318_v48, 0.0  ;;  %v322_v60 = vld [vmem:[%s2458_s21 + $0xd0] sm:$0xff]  ;;  %v463_v62 = vsel %vm328_vm1, %v313_v51, 0.0 }
  0x22   : > { %370 = vst.msk [vmem:[#allocation2 + $0x140] sm:$0xff] %vm328_vm1, %v2330_v1  ;;  %v427_v30 = vadd.f32 %v426_v21, %v425_v24  ;;  %v317_v63 = vld [vmem:[%s2458_s21 + $0xa8] sm:$0xff]  ;;  %v440_v0 = vsel %vm328_vm1, %v320_v54, 0.0  ;;  %v465_v9 = vsel %vm328_vm1, %v315_v57, 0.0  ;;  %v319_v10 = vld [vmem:[%s2458_s21 + $0xb8] sm:$0xff]  ;;  %v324_v12 = vld [vmem:[%s2458_s21 + $0xe0] sm:$0xff] }
  0x23   : > { %371 = vst.msk [vmem:[#allocation2 + $0x148] sm:$0x3] %vm331_vm2, %v2330_v1  ;;  %v456_v47 = vadd.f32 %v455_v38, %v454_v41  ;;  %v442_v14 = vsel %vm328_vm1, %v322_v60, 0.0  ;;  %v467_v19 = vsel %vm328_vm1, %v317_v63, 0.0  ;;  %v321_v21 = vld [vmem:[%s2458_s21 + $0xc8] sm:$0xff]  ;;  %v469_v28 = vsel %vm328_vm1, %v319_v10, 0.0 }
  0x24   : > { %372 = vst.msk [vmem:[#allocation2 + $0x150] sm:$0xff] %vm328_vm1, %v2330_v1  ;;  %v429_v37 = vadd.f32 %v428_v27, %v427_v30  ;;  %v444_v27 = vsel %vm328_vm1, %v324_v12, 0.0  ;;  %v326_v30 = vld [vmem:[%s2458_s21 + $0xf0] sm:$0xff]  ;;  %v325_v34 = vld [vmem:[%s2458_s21 + $0xe8] sm:$0xff] }
  0x25   : > { %373 = vst.msk [vmem:[#allocation2 + $0x158] sm:$0xff] %vm328_vm1, %v2330_v1  ;;  %v458_v53 = vadd.f32 %v457_v44, %v456_v47 }
  0x26   : > { %374 = vst.msk [vmem:[#allocation2 + $0x160] sm:$0x3] %vm331_vm2, %v2330_v1  ;;  %v431_v43 = vadd.f32 %v430_v33, %v429_v37  ;;  %v471_v33 = vsel %vm328_vm1, %v321_v21, 0.0  ;;  %v446_v37 = vsel %vm328_vm1, %v326_v30, 0.0 }
  0x27   : > { %375 = vst.msk [vmem:[#allocation2 + $0x168] sm:$0xff] %vm328_vm1, %v2330_v1  ;;  %v460_v59 = vadd.f32 %v459_v50, %v458_v53 }
  0x28   : > { %376 = vst.msk [vmem:[#allocation2 + $0x170] sm:$0xff] %vm328_vm1, %v2330_v1  ;;  %v433_v49 = vadd.f32 %v432_v40, %v431_v43  ;;  %v327_v40 = vld [vmem:[%s2458_s21 + $0xf8] sm:$0xff] }
  0x29   : > { %377 = vst.msk [vmem:[#allocation2 + $0x178] sm:$0x3] %vm331_vm2, %v2330_v1  ;;  %v462_v5 = vadd.f32 %v461_v56, %v460_v59 }
  0x2a   : > { %378 = vst.msk [vmem:[#allocation2 + $0x180] sm:$0xff] %vm328_vm1, %v2330_v1  ;;  %v435_v55 = vadd.f32 %v434_v46, %v433_v49  ;;  %v477_v46 = vsel %vm328_vm1, %v327_v40, 0.0 }
  0x2b   : > { %379 = vst.msk [vmem:[#allocation2 + $0x188] sm:$0xff] %vm328_vm1, %v2330_v1  ;;  %v464_v16 = vadd.f32 %v463_v62, %v462_v5 }
  0x2c   : > { %380 = vst.msk [vmem:[#allocation2 + $0x190] sm:$0x3] %vm331_vm2, %v2330_v1  ;;  %v437_v61 = vadd.f32 %v436_v52, %v435_v55 }
  0x2d   : > { %401 = vst.msk [vmem:[#allocation2 + $0xd9] sm:$0xff] %vm328_vm1, %v312_v29  ;;  %v466_v24 = vadd.f32 %v465_v9, %v464_v16  ;;  %v323_v29 = vld [vmem:[%s2458_s21 + $0xd8] sm:$0xff] }
  0x2e   : > { %402 = vst.msk [vmem:[#allocation2 + $0xe1] sm:$0xff] %vm328_vm1, %v313_v51  ;;  %v439_v6 = vadd.f32 %v438_v58, %v437_v61  ;;  %v473_v38 = vsel %vm328_vm1, %v323_v29, 0.0 }
  0x2f   : > { %403 = vst.msk [vmem:[#allocation2 + $0xf1] sm:$0xff] %vm328_vm1, %v314_v36  ;;  %v468_v31 = vadd.f32 %v467_v19, %v466_v24 }
  0x30   : > { %404 = vst.msk [vmem:[#allocation2 + $0xf9] sm:$0xff] %vm328_vm1, %v315_v57  ;;  %v441_v18 = vadd.f32 %v440_v0, %v439_v6 }
  0x31   : > { %405 = vst.msk [vmem:[#allocation2 + $0x109] sm:$0xff] %vm328_vm1, %v316_v42  ;;  %v470_v36 = vadd.f32 %v469_v28, %v468_v31  ;;  %v475_v42 = vsel %vm328_vm1, %v325_v34, 0.0 }
  0x32   : > { %406 = vst.msk [vmem:[#allocation2 + $0x111] sm:$0xff] %vm328_vm1, %v317_v63  ;;  %v443_v25 = vadd.f32 %v442_v14, %v441_v18 }
  0x33   : > { %407 = vst.msk [vmem:[#allocation2 + $0x121] sm:$0xff] %vm328_vm1, %v318_v48  ;;  %v472_v41 = vadd.f32 %v471_v33, %v470_v36 }
  0x34   : > { %408 = vst.msk [vmem:[#allocation2 + $0x129] sm:$0xff] %vm328_vm1, %v319_v10  ;;  %v445_v35 = vadd.f32 %v444_v27, %v443_v25 }
  0x35   : > { %409 = vst.msk [vmem:[#allocation2 + $0x139] sm:$0xff] %vm328_vm1, %v320_v54  ;;  %v474_v44 = vadd.f32 %v473_v38, %v472_v41 }
  0x36   : > { %410 = vst.msk [vmem:[#allocation2 + $0x141] sm:$0xff] %vm328_vm1, %v321_v21  ;;  %v447_v43 = vadd.f32 %v446_v37, %v445_v35 }
  0x37   : > { %411 = vst.msk [vmem:[#allocation2 + $0x151] sm:$0xff] %vm328_vm1, %v322_v60  ;;  %v476_v47 = vadd.f32 %v475_v42, %v474_v44 }
  0x38   : > { %412 = vst.msk [vmem:[#allocation2 + $0x159] sm:$0xff] %vm328_vm1, %v323_v29  ;;  %v479_v49 = vsel %vm328_vm1, %v447_v43, 0.0 }
  0x39   : > { %413 = vst.msk [vmem:[#allocation2 + $0x169] sm:$0xff] %vm328_vm1, %v324_v12  ;;  %v478_v48 = vadd.f32 %v477_v46, %v476_v47 }
  0x3a   : > { %414 = vst.msk [vmem:[#allocation2 + $0x171] sm:$0xff] %vm328_vm1, %v325_v34  ;;  %v680_v47 = vld [vmem:[#allocation2 + $0x120] sm:$0xff] }
  0x3b   : > { %415 = vst.msk [vmem:[#allocation2 + $0x181] sm:$0xff] %vm328_vm1, %v326_v30  ;;  %v480_v50 = vsel %vm328_vm1, %v478_v48, 0.0  ;;  %v681_v48 = vld [vmem:[#allocation2 + $0x128] sm:$0xff] }
  0x3c   : > { %416 = vst.msk [vmem:[#allocation2 + $0x189] sm:$0xff] %vm328_vm1, %v327_v40  ;;  %v481_v51 = vadd.f32 %v480_v50, %v479_v49  ;;  %v682_v36 = vld [vmem:[#allocation2 + $0x138] sm:$0xff]  ;;  %v700_v50 = vpack.c.bf16 %v681_v48, %v680_v47 }
  0x3d   : > { %329 = vst.msk [vmem:[#allocation2] sm:$0xff] %vm328_vm1, %v2330_v1  ;;  %v683_v37 = vld [vmem:[#allocation2 + $0x140] sm:$0xff] }
  0x3e   : > { %330 = vst.msk [vmem:[#allocation2 + $0x8] sm:$0xff] %vm328_vm1, %v2330_v1  ;;  %v482_v52 = vrot.slane %v481_v51, 4  ;;  %v684_v28 = vld [vmem:[#allocation2 + $0x150] sm:$0xff]  ;;  %v701_v41 = vpack.c.bf16 %v683_v37, %v682_v36 }
  0x3f   : > { %332 = vst.msk [vmem:[#allocation2 + $0x10] sm:$0x3] %vm331_vm2, %v2330_v1  ;;  %v685_v30 = vld [vmem:[#allocation2 + $0x158] sm:$0xff] }
  0x40   : > { %333 = vst.msk [vmem:[#allocation2 + $0x18] sm:$0xff] %vm328_vm1, %v2330_v1  ;;  %v483_v53 = vadd.f32 %v482_v52, %v481_v51  ;;  %v686_v14 = vld [vmem:[#allocation2 + $0x168] sm:$0xff]  ;;  %v702_v31 = vpack.c.bf16 %v685_v30, %v684_v28  ;;  %v2763_v43 = vsel %vm328_vm1, %v701_v41, 0  ;;  %v2771_v52 = vsel %vm328_vm1, %v700_v50, 0  ;;  %v734_v36 = vld [vmem:[#allocation2 + $0x159] sm:$0xff] }
  0x41   : > { %334 = vst.msk [vmem:[#allocation2 + $0x20] sm:$0xff] %vm328_vm1, %v2330_v1  ;;  %v687_v18 = vld [vmem:[#allocation2 + $0x170] sm:$0xff] }
  0x42   : > { %335 = vst.msk [vmem:[#allocation2 + $0x28] sm:$0x3] %vm331_vm2, %v2330_v1  ;;  %v484_v54 = vrot.slane %v483_v53, 2  ;;  %v703_v19 = vpack.c.bf16 %v687_v18, %v686_v14  ;;  %v2756_v38 = vsel %vm328_vm1, %v702_v31, 0  ;;  %v1985_v37 = vld [vmem:[#allocation2 + $0x180] sm:$0xff] }
  0x43   : > { %336 = vst.msk [vmem:[#allocation2 + $0x30] sm:$0xff] %vm328_vm1, %v2330_v1 }
  0x44   : > { %337 = vst.msk [vmem:[#allocation2 + $0x38] sm:$0xff] %vm328_vm1, %v2330_v1  ;;  %v485_v55 = vadd.f32 %v484_v54, %v483_v53  ;;  %v2748_v24 = vsel %vm328_vm1, %v703_v19, 0  ;;  %v656_v18 = vld [vmem:[#allocation2] sm:$0xff] }
  0x45   : > { %338 = vst.msk [vmem:[#allocation2 + $0x40] sm:$0x3] %vm331_vm2, %v2330_v1  ;;  %v657_v19 = vld [vmem:[#allocation2 + $0x8] sm:$0xff] }
  0x46   : > { %339 = vst.msk [vmem:[#allocation2 + $0x48] sm:$0xff] %vm328_vm1, %v2330_v1  ;;  %v486_v56 = vrot.slane %v485_v55, 1 }
  0x47   : > { %340 = vst.msk [vmem:[#allocation2 + $0x50] sm:$0xff] %vm328_vm1, %v2330_v1 }
  0x48   : > { %341 = vst.msk [vmem:[#allocation2 + $0x58] sm:$0x3] %vm331_vm2, %v2330_v1  ;;  %v487_v57 = vadd.f32 %v486_v56, %v485_v55  ;;  %v678_v55 = vld [vmem:[#allocation2 + $0x108] sm:$0xff]  ;;  %v679_v56 = vld [vmem:[#allocation2 + $0x110] sm:$0xff] }
  0x49   : > { %342 = vst.msk [vmem:[#allocation2 + $0x60] sm:$0xff] %vm328_vm1, %v2330_v1 }
  0x4a   : > { %343 = vst.msk [vmem:[#allocation2 + $0x68] sm:$0xff] %vm328_vm1, %v2330_v1  ;;  %v488_v58 = vmul.f32 0.00390625, %v487_v57 }
  0x4b   : > { %344 = vst.msk [vmem:[#allocation2 + $0x70] sm:$0x3] %vm331_vm2, %v2330_v1 }
  0x4c   : > { %345 = vst.msk [vmem:[#allocation2 + $0x78] sm:$0xff] %vm328_vm1, %v2330_v1  ;;  %1940 = vmatmul.msk.f32.vlgmr.msra.gmra.mxu0 %vm328_vm1, %v488_v58 }
  0x4d   : > { %346 = vst.msk [vmem:[#allocation2 + $0x80] sm:$0xff] %vm328_vm1, %v2330_v1 }
  0x4e   : > { %347 = vst.msk [vmem:[#allocation2 + $0x88] sm:$0x3] %vm331_vm2, %v2330_v1 }
  0x4f   : > { %348 = vst.msk [vmem:[#allocation2 + $0x90] sm:$0xff] %vm328_vm1, %v2330_v1 }
  0x50   : > { %349 = vst.msk [vmem:[#allocation2 + $0x98] sm:$0xff] %vm328_vm1, %v2330_v1 }
  0x51   : > { %350 = vst.msk [vmem:[#allocation2 + $0xa0] sm:$0x3] %vm331_vm2, %v2330_v1 }
  0x52   : > { %351 = vst.msk [vmem:[#allocation2 + $0xa8] sm:$0xff] %vm328_vm1, %v2330_v1 }
  0x53   : > { %352 = vst.msk [vmem:[#allocation2 + $0xb0] sm:$0xff] %vm328_vm1, %v2330_v1 }
  0x54   : > { %353 = vst.msk [vmem:[#allocation2 + $0xb8] sm:$0x3] %vm331_vm2, %v2330_v1 }
  0x55   : > { %354 = vst.msk [vmem:[#allocation2 + $0xc0] sm:$0xff] %vm328_vm1, %v2330_v1 }
  0x56   : > { %355 = vst.msk [vmem:[#allocation2 + $0xc8] sm:$0xff] %vm328_vm1, %v2330_v1 }
  0x57   : > { %356 = vst.msk [vmem:[#allocation2 + $0xd0] sm:$0x3] %vm331_vm2, %v2330_v1 }
  0x58   : > { %381 = vst.msk [vmem:[#allocation2 + $0x198] sm:$0xff] %vm328_vm1, %v2330_v1 }
  0x59   : > { %382 = vst.msk [vmem:[#allocation2 + $0x1a0] sm:$0xff] %vm328_vm1, %v2330_v1 }
  0x5a   : > { %383 = vst.msk [vmem:[#allocation2 + $0x1a8] sm:$0x3] %vm331_vm2, %v2330_v1  ;;  %v519_v1 = vld [vmem:[%s3136_s3] sm:$0xf] }
  0x5b   : > { %385 = vst.msk [vmem:[#allocation2 + $0x19] sm:$0xff] %vm328_vm1, %v2463_v2  ;;  %1941 = vmatpush.msk.msra.mxu1 %vm494_vm0, %v519_v1  ;;  %v490_v2 = vld [vmem:[%s3135_s2] sm:$0x1]  ;;  %v699_v1 = vpack.c.bf16 %v679_v56, %v678_v55 }
  0x5c   : > { %386 = vst.msk [vmem:[#allocation2 + $0x21] sm:$0xff] %vm328_vm1, %v2490_v11  ;;  %v731_v55 = vld [vmem:[#allocation2 + $0x139] sm:$0xff] }
  0x5d   : > { %387 = vst.msk [vmem:[#allocation2 + $0x31] sm:$0xff] %vm328_vm1, %v2466_v3  ;;  %900 = vmatpush.bf16.xpose.msrb.mxu1 %v2748_v24 }
  0x5e   : > { %388 = vst.msk [vmem:[#allocation2 + $0x39] sm:$0xff] %vm328_vm1, %v2502_v15 }
  0x5f   : > { %389 = vst.msk [vmem:[#allocation2 + $0x49] sm:$0xff] %vm328_vm1, %v2471_v4 }
  0x60   : > { %390 = vst.msk [vmem:[#allocation2 + $0x51] sm:$0xff] %vm328_vm1, %v2516_v20 }
  0x61   : > { %391 = vst.msk [vmem:[#allocation2 + $0x61] sm:$0xff] %vm328_vm1, %v2480_v7 }
  0x62   : > { %392 = vst.msk [vmem:[#allocation2 + $0x69] sm:$0xff] %vm328_vm1, %v2523_v22 }
  0x63   : > { %393 = vst.msk [vmem:[#allocation2 + $0x79] sm:$0xff] %vm328_vm1, %v2483_v8  ;;  %v520_v8 = vld [vmem:[%s3137_s4] sm:$0x1] }
  0x64   : > { %394 = vst.msk [vmem:[#allocation2 + $0x81] sm:$0xff] %vm328_vm1, %v2533_v26 }
  0x65   : > { %395 = vst.msk [vmem:[#allocation2 + $0x91] sm:$0xff] %vm328_vm1, %v2497_v13  ;;  %901 = vmatpush.bf16.xpose.msrb.mxu1 %v2756_v38 }
  0x66   : > { %396 = vst.msk [vmem:[#allocation2 + $0x99] sm:$0xff] %vm328_vm1, %v2545_v32  ;;  %v662_v53 = vld [vmem:[#allocation2 + $0x48] sm:$0xff] }
  0x67   : > { %397 = vst.msk [vmem:[#allocation2 + $0xa9] sm:$0xff] %vm328_vm1, %v2509_v17  ;;  %v663_v54 = vld [vmem:[#allocation2 + $0x50] sm:$0xff] }
  0x68   : > { %398 = vst.msk [vmem:[#allocation2 + $0xb1] sm:$0xff] %vm328_vm1, %v2559_v39  ;;  %v664_v44 = vld [vmem:[#allocation2 + $0x60] sm:$0xff]  ;;  %v691_v57 = vpack.c.bf16 %v663_v54, %v662_v53 }
  0x69   : > { %399 = vst.msk [vmem:[#allocation2 + $0xc1] sm:$0xff] %vm328_vm1, %v2526_v23  ;;  %v665_v46 = vld [vmem:[#allocation2 + $0x68] sm:$0xff] }
  0x6a   : > { %400 = vst.msk [vmem:[#allocation2 + $0xc9] sm:$0xff] %vm328_vm1, %v2570_v45  ;;  %v666_v33 = vld [vmem:[#allocation2 + $0x78] sm:$0xff]  ;;  %v692_v49 = vpack.c.bf16 %v665_v46, %v664_v44  ;;  %v1986_v44 = vld [vmem:[#allocation2 + $0x188] sm:$0xff] }
  0x6b   : > { %v667_v34 = vld [vmem:[#allocation2 + $0x80] sm:$0xff]  ;;  %v1092_v48 = vpack.c.bf16 %v1986_v44, %v1985_v37  ;;  %v709_v37 = vld [vmem:[#allocation2 + $0x31] sm:$0xff] }
  0x6c   : > { %v668_v25 = vld [vmem:[#allocation2 + $0x90] sm:$0xff]  ;;  %v693_v40 = vpack.c.bf16 %v667_v34, %v666_v33  ;;  %v2768_v51 = vsel %vm328_vm1, %v692_v49, 0  ;;  %v715_v53 = vld [vmem:[#allocation2 + $0x79] sm:$0xff]  ;;  %v716_v54 = vld [vmem:[#allocation2 + $0x81] sm:$0xff] }
  0x6d   : > { %v669_v27 = vld [vmem:[#allocation2 + $0x98] sm:$0xff]  ;;  %902 = vmatpush.bf16.xpose.msrb.mxu1 %v2763_v43  ;;  %v1144_v50 = vsel %vm328_vm1, %v1092_v48, 0  ;;  %v742_v56 = vpack.c.bf16 %v716_v54, %v715_v53 }
  0x6e   : > { %v670_v10 = vld [vmem:[#allocation2 + $0xa8] sm:$0xff]  ;;  %v694_v29 = vpack.c.bf16 %v669_v27, %v668_v25  ;;  %v2760_v42 = vsel %vm328_vm1, %v693_v40, 0  ;;  %v688_v27 = vpack.c.bf16 %v657_v19, %v656_v18  ;;  %v718_v30 = vld [vmem:[#allocation2 + $0x99] sm:$0xff]  ;;  %v733_v34 = vld [vmem:[#allocation2 + $0x151] sm:$0xff] }
  0x6f   : > { %v671_v12 = vld [vmem:[#allocation2 + $0xb0] sm:$0xff]  ;;  %v751_v41 = vpack.c.bf16 %v734_v36, %v733_v34 }
  0x70   : > { %v695_v16 = vpack.c.bf16 %v671_v12, %v670_v10  ;;  %v2752_v35 = vsel %vm328_vm1, %v694_v29, 0  ;;  %v672_v25 = vld [vmem:[#allocation2 + $0xc0] sm:$0xff]  ;;  %v717_v29 = vld [vmem:[#allocation2 + $0x91] sm:$0xff]  ;;  %v840_v40 = vsel %vm328_vm1, %v688_v27, 0 }
  0x71   : > { %v673_v28 = vld [vmem:[#allocation2 + $0xc8] sm:$0xff]  ;;  %v743_v33 = vpack.c.bf16 %v718_v30, %v717_v29  ;;  %v2814_v49 = vsel %vm328_vm1, %v751_v41, 0  ;;  %v725_v41 = vld [vmem:[#allocation2 + $0xf1] sm:$0xff] }
  0x72   : > { %v2744_v21 = vsel %vm328_vm1, %v695_v16, 0  ;;  %v696_v31 = vpack.c.bf16 %v673_v28, %v672_v25 }
  0x73   : > { %887 = vmatpush.bf16.xpose.msrb.mxu0 %v2744_v21  ;;  %v2810_v47 = vsel %vm328_vm1, %v743_v33, 0 }
  0x74   : > { %v864_v46 = vsel %vm328_vm1, %v696_v31, 0 }
  0x75   : > { %903 = vmatpush.bf16.xpose.msrb.mxu1 %v2771_v52 }
  0x7b   : > { %888 = vmatpush.bf16.xpose.msrb.mxu0 %v2752_v35 }
  0x83   : > { %889 = vmatpush.bf16.xpose.msrb.mxu0 %v2760_v42 }
  0x8b   : > { %890 = vmatpush.bf16.xpose.msrb.mxu0 %v2768_v51 }
  0xc9   : > { %v515_v3 = vpop.f32.mrf.mxu0 }
  0xca   : > { %v516_v4 = vadd.f32 %v515_v3, %v490_v2  ;;  %v2776_v2 = vsel %vm328_vm1, %v691_v57, 0  ;;  %v2779_v3 = vsel %vm328_vm1, %v699_v1, 0  ;;  %v732_v57 = vld [vmem:[#allocation2 + $0x141] sm:$0xff]  ;;  %v2819_v1 = vsel %vm328_vm1, %v742_v56, 0  ;;  %v723_v56 = vld [vmem:[#allocation2 + $0xd9] sm:$0xff] }
  0xcb   : > { %891 = vmatpush.bf16.xpose.msrb.mxu0 %v2776_v2  ;;  %904 = vmatpush.bf16.xpose.msrb.mxu1 %v2779_v3 }
  0xcc   : > { %v518_v7 = vmax.f32 %v516_v4, 0.0  ;;  %v660_v4 = vld [vmem:[#allocation2 + $0x30] sm:$0xff] }
  0xce   : > { %1942 = vmatmul.msk.f32.vlgmr.msra.gmra.mxu1 %vm328_vm1, %v518_v7  ;;  %v661_v7 = vld [vmem:[#allocation2 + $0x38] sm:$0xff] }
 0x14b   : > { %v544_v11 = vpop.f32.mrf.mxu1 }
 0x14c   : > { %v545_v13 = vadd.f32 %v544_v11, %v520_v8  ;;  %v676_v8 = vld [vmem:[#allocation2 + $0xf0] sm:$0xff]  ;;  %v677_v11 = vld [vmem:[#allocation2 + $0xf8] sm:$0xff] }
 0x14e   : > { %v548_v15 = vsel %vm547_vm3, %v545_v13, -inf }
 0x14f   : > { %549 = vmax.xlane.f32.xlu0 %v548_v15 }
 0x1c2   : > { %v550_v17 = vpop.xlane.xlu0 %549 }
 0x1c3   : > { %v551_v20 = vsub.f32 %v545_v13, %v550_v17  ;;  %v690_v13 = vpack.c.bf16 %v661_v7, %v660_v4  ;;  %v698_v17 = vpack.c.bf16 %v677_v11, %v676_v8  ;;  %v713_v7 = vld [vmem:[#allocation2 + $0x61] sm:$0xff]  ;;  %v714_v8 = vld [vmem:[#allocation2 + $0x69] sm:$0xff] }
 0x1c4   : > { %v729_v11 = vld [vmem:[#allocation2 + $0x121] sm:$0xff] }
 0x1c5   : > { %v552_v22 = vmul.f32 1.442695, %v551_v20 }
 0x1c7   : > { %2246 = vpow2.f32 %v552_v22  ;;  %v2784_v22 = vsel %vm328_vm1, %v690_v13, 0  ;;  %v741_v13 = vpack.c.bf16 %v714_v8, %v713_v7 }
 0x1c8   : > { %892 = vmatpush.bf16.xpose.msrb.mxu0 %v2784_v22 }
 0x1cd   : > { %v2247_v23 = vpop.eup %2246 }
 0x1ce   : > { %v554_v26 = vsel %vm547_vm3, %v2247_v23, 0.0 }
 0x1cf   : > { %555 = vadd.xlane.f32.xlu0 %v554_v26  ;;  %v658_v26 = vld [vmem:[#allocation2 + $0x18] sm:$0xff] }
 0x242   : > { %v556_v32 = vpop.xlane.xlu0 %555 }
 0x243   : > { %2248 = vrcp.f32 %v556_v32  ;;  %v568_v60 = vand.u32 2147483648, %v556_v32  ;;  %v566_v62 = vand.u32 2147483647, %v556_v32  ;;  %vm562_vm5 = vweird.f32 %v556_v32 }
 0x245   : > { %v569_v0 = vor.u32 1.1754944e-38, %v568_v60  ;;  %vm567_vm7 = vcmp.eq.f32.partialorder %v566_v62, 8.507059e+37  ;;  %v719_v60 = vld [vmem:[#allocation2 + $0xa9] sm:$0xff] }
 0x249   : > { %v2249_v39 = vpop.eup %2248 }
 0x24a   : > { %v558_v45 = vmul.f32 %v2249_v39, %v556_v32  ;;  %vm563_vm4 = vweird.f32 %v2249_v39  ;;  %v659_v32 = vld [vmem:[#allocation2 + $0x20] sm:$0xff] }
 0x24b   : > { %vm564_vm6 = vmor %vm562_vm5, %vm563_vm4 }
 0x24c   : > { %v559_v59 = vsub.f32 1.0, %v558_v45  ;;  %v689_v45 = vpack.c.bf16 %v659_v32, %v658_v26  ;;  %v2832_v26 = vsel %vm328_vm1, %v741_v13, 0 }
 0x24e   : > { %v560_v61 = vmul.f32 %v2249_v39, %v559_v59  ;;  %v675_v59 = vld [vmem:[#allocation2 + $0xe0] sm:$0xff] }
 0x250   : > { %v561_v63 = vadd.f32 %v2249_v39, %v560_v61  ;;  %v720_v61 = vld [vmem:[#allocation2 + $0xb1] sm:$0xff] }
 0x252   : > { %v565_v5 = vsel %vm564_vm6, %v2249_v39, %v561_v63  ;;  %v674_v39 = vld [vmem:[#allocation2 + $0xd8] sm:$0xff]  ;;  %v744_v63 = vpack.c.bf16 %v720_v61, %v719_v60  ;;  %v711_v60 = vld [vmem:[#allocation2 + $0x49] sm:$0xff] }
 0x253   : > { %v570_v6 = vsel %vm567_vm7, %v569_v0, %v565_v5  ;;  %v697_v62 = vpack.c.bf16 %v675_v59, %v674_v39  ;;  %v735_v0 = vld [vmem:[#allocation2 + $0x169] sm:$0xff]  ;;  %v736_v5 = vld [vmem:[#allocation2 + $0x171] sm:$0xff] }
 0x254   : > { %v2734_v9 = vmul.f32 %v2247_v23, %v570_v6  ;;  %v2787_v23 = vsel %vm328_vm1, %v698_v17, 0  ;;  %v2792_v6 = vsel %vm328_vm1, %v689_v45, 0  ;;  %v752_v10 = vpack.c.bf16 %v736_v5, %v735_v0  ;;  %v1945_v45 = vld [vmem:[%s3138_s5 + $0x8] sm:$0xf]  ;;  %v712_v61 = vld [vmem:[#allocation2 + $0x51] sm:$0xff] }
 0x255   : > { %905 = vmatpush.bf16.xpose.msrb.mxu1 %v2787_v23  ;;  %893 = vmatpush.bf16.xpose.msrb.mxu0 %v2792_v6  ;;  %v2796_v12 = vsel %vm328_vm1, %v697_v62, 0  ;;  %v2799_v14 = vsel %vm328_vm1, %v744_v63, 0  ;;  %v727_v62 = vld [vmem:[#allocation2 + $0x109] sm:$0xff]  ;;  %v740_v5 = vpack.c.bf16 %v712_v61, %v711_v60  ;;  %v606_v18 = vunpack.c.l.bf16 %v1945_v45  ;;  %v928_v45 = vld [vmem:[#allocation2 + $0xb2] sm:$0xff] }
 0x256   : > { %629 = vrot.lane.b32.xlu2 %v2734_v9, %s2331_s15  ;;  %585 = vrot.lane.b32.xlu1 %v2734_v9, %s2332_s16  ;;  %2166 = vpush %v2734_v9  ;;  %v2804_v16 = vsel %vm328_vm1, %v752_v10, 0  ;;  %v1947_v0 = vld [vmem:[%s3138_s5 + $0xc] sm:$0xf]  ;;  %v728_v10 = vld [vmem:[#allocation2 + $0x111] sm:$0xff] }
 0x257   : > { %810 = vmatpush.bf16.xpose.msra.mxu2 %v2799_v14  ;;  %823 = vmatpush.bf16.xpose.msra.mxu3 %v2804_v16  ;;  %v748_v19 = vpack.c.bf16 %v728_v10, %v727_v62  ;;  %v628_v27 = vunpack.c.l.bf16 %v1947_v0  ;;  %v943_v60 = vld [vmem:[#allocation2 + $0x16a] sm:$0xff]  ;;  %v944_v61 = vld [vmem:[#allocation2 + $0x172] sm:$0xff]  ;;  %v926_v10 = vld [vmem:[#allocation2 + $0x9a] sm:$0xff] }
 0x258   : > { %v960_v62 = vpack.c.bf16 %v944_v61, %v943_v60  ;;  %v917_v61 = vld [vmem:[#allocation2 + $0x32] sm:$0xff] }
 0x259   : > { %v2855_v28 = vsel %vm328_vm1, %v748_v19, 0 }
 0x25a   : > { %v2897_v19 = vsel %vm328_vm1, %v960_v62, 0  ;;  %v933_v62 = vld [vmem:[#allocation2 + $0xf2] sm:$0xff] }
 0x25d   : > { %906 = vmatpush.bf16.xpose.msrb.mxu1 %v2796_v12  ;;  %894 = vmatpush.bf16.xpose.msrb.mxu0 %v840_v40  ;;  %v710_v40 = vld [vmem:[#allocation2 + $0x39] sm:$0xff] }
 0x25e   : > { %607 = vrot.lane.b32.xlu1 %v2734_v9, %s2333_s17  ;;  %v739_v44 = vpack.c.bf16 %v710_v40, %v709_v37 }
 0x25f   : > { %811 = vmatpush.bf16.xpose.msra.mxu2 %v2810_v47  ;;  %824 = vmatpush.bf16.xpose.msra.mxu3 %v2814_v49 }
 0x260   : > { %v2861_v53 = vsel %vm328_vm1, %v739_v44, 0  ;;  %v924_v44 = vld [vmem:[#allocation2 + $0x82] sm:$0xff] }
 0x265   : > { %907 = vmatpush.bf16.xpose.msrb.mxu1 %v864_v46  ;;  %1146 = vmatpush.bf16.xpose.msra.mxu0 %v864_v46  ;;  %v726_v46 = vld [vmem:[#allocation2 + $0xf9] sm:$0xff] }
 0x267   : > { %812 = vmatpush.bf16.xpose.msra.mxu2 %v2819_v1 }
 0x26d   : > { %1159 = vmatpush.bf16.xpose.msra.mxu1 %v1144_v50  ;;  %1147 = vmatpush.bf16.xpose.msra.mxu0 %v2744_v21  ;;  %v747_v50 = vpack.c.bf16 %v726_v46, %v725_v41  ;;  %v923_v41 = vld [vmem:[#allocation2 + $0x7a] sm:$0xff] }
 0x26e   : > { %v939_v46 = vld [vmem:[#allocation2 + $0x13a] sm:$0xff] }
 0x26f   : > { %813 = vmatpush.bf16.xpose.msra.mxu2 %v2832_v26 }
 0x275   : > { %1160 = vmatpush.bf16.xpose.msra.mxu1 %v2748_v24  ;;  %v572_v24 = vld [vmem:[%s3138_s5] sm:$0xf]  ;;  %1148 = vmatpush.bf16.xpose.msra.mxu0 %v2752_v35 }
 0x276   : > { %v573_v59 = vunpack.c.l.bf16 %v572_v24 }
 0x27d   : > { %1161 = vmatpush.bf16.xpose.msra.mxu1 %v2756_v38  ;;  %v2851_v38 = vsel %vm328_vm1, %v740_v5, 0  ;;  %1149 = vmatpush.bf16.xpose.msra.mxu0 %v2760_v42  ;;  %v2865_v42 = vsel %vm328_vm1, %v747_v50, 0 }
 0x27e   : > { %814 = vmatpush.bf16.xpose.msra.mxu2 %v2851_v38 }
 0x285   : > { %1162 = vmatpush.bf16.xpose.msra.mxu1 %v2763_v43  ;;  %1150 = vmatpush.bf16.xpose.msra.mxu0 %v2768_v51  ;;  %v707_v43 = vld [vmem:[#allocation2 + $0x19] sm:$0xff] }
 0x286   : > { %815 = vmatpush.bf16.xpose.msra.mxu2 %v2861_v53 }
 0x287   : > { %s2167_s18 = spop %2166 }
 0x288   : > { %v576_v63 = vstv %s2167_s18 }
 0x289   : > { %v578_v25 = vmul.f32 %v576_v63, %v573_v59  ;;  %v925_v63 = vld [vmem:[#allocation2 + $0x92] sm:$0xff] }
 0x28d   : > { %1163 = vmatpush.bf16.xpose.msra.mxu1 %v2771_v52  ;;  %1151 = vmatpush.bf16.xpose.msra.mxu0 %v2776_v2 }
 0x295   : > { %1164 = vmatpush.bf16.xpose.msra.mxu1 %v2779_v3  ;;  %1152 = vmatpush.bf16.xpose.msra.mxu0 %v2784_v22 }
 0x29d   : > { %1165 = vmatpush.bf16.xpose.msra.mxu1 %v2787_v23  ;;  %1153 = vmatpush.bf16.xpose.msra.mxu0 %v2792_v6 }
 0x2a5   : > { %1166 = vmatpush.bf16.xpose.msra.mxu1 %v2796_v12  ;;  %v922_v12 = vld [vmem:[#allocation2 + $0x6a] sm:$0xff] }
 0x2b0   : > { %v630_v20 = vpop.permute.xlu2 %629 }
 0x2c8   : > { %v586_v58 = vpop.permute.xlu1 %585 }
 0x2c9   : > { %2168 = vpush %v586_v58  ;;  %v750_v58 = vpack.c.bf16 %v732_v57, %v731_v55  ;;  %v708_v55 = vld [vmem:[#allocation2 + $0x21] sm:$0xff] }
 0x2ca   : > { %v738_v57 = vpack.c.bf16 %v708_v55, %v707_v43 }
 0x2cb   : > { %v2822_v4 = vsel %vm328_vm1, %v750_v58, 0  ;;  %v724_v58 = vld [vmem:[#allocation2 + $0xe1] sm:$0xff] }
 0x2cc   : > { %825 = vmatpush.bf16.xpose.msra.mxu3 %v2822_v4  ;;  %v746_v7 = vpack.c.bf16 %v724_v58, %v723_v56  ;;  %v2871_v8 = vsel %vm328_vm1, %v738_v57, 0  ;;  %v921_v56 = vld [vmem:[#allocation2 + $0x62] sm:$0xff]  ;;  %v938_v58 = vld [vmem:[#allocation2 + $0x12a] sm:$0xff] }
 0x2cd   : > { %816 = vmatpush.bf16.xpose.msra.mxu2 %v2871_v8  ;;  %v937_v57 = vld [vmem:[#allocation2 + $0x122] sm:$0xff] }
 0x2d0   : > { %v608_v15 = vpop.permute.xlu1 %607 }
 0x2d1   : > { %2170 = vpush %v608_v15  ;;  %v730_v15 = vld [vmem:[#allocation2 + $0x129] sm:$0xff] }
 0x2d2   : > { %2172 = vpush %v630_v20  ;;  %v749_v17 = vpack.c.bf16 %v730_v15, %v729_v11  ;;  %v1943_v20 = vld [vmem:[%s3138_s5 + $0x4] sm:$0xf]  ;;  %v2875_v11 = vsel %vm328_vm1, %v746_v7, 0  ;;  %v1946_v7 = vld [vmem:[%s3139_s6 + $0x10] sm:$0xff] }
 0x2d3   : > { %v584_v32 = vunpack.c.l.bf16 %v1943_v20  ;;  %v705_v15 = vld [vmem:[#allocation2 + $0x1] sm:$0xff] }
 0x2d4   : > { %v2836_v21 = vsel %vm328_vm1, %v749_v17, 0  ;;  %v706_v17 = vld [vmem:[#allocation2 + $0x9] sm:$0xff]  ;;  %v721_v20 = vld [vmem:[#allocation2 + $0xc1] sm:$0xff] }
 0x2d5   : > { %826 = vmatpush.bf16.xpose.msra.mxu3 %v2836_v21  ;;  %v737_v24 = vpack.c.bf16 %v706_v17, %v705_v15 }
 0x2d7   : > { %v763_v3 = vsel %vm328_vm1, %v737_v24, 0  ;;  %v920_v24 = vld [vmem:[#allocation2 + $0x52] sm:$0xff] }
 0x2d8   : > { %817 = vmatpush.bf16.xpose.msra.mxu2 %v763_v3  ;;  %v918_v3 = vld [vmem:[#allocation2 + $0x3a] sm:$0xff] }
 0x2dd   : > { %827 = vmatpush.bf16.xpose.msra.mxu3 %v2855_v28 }
 0x2e5   : > { %828 = vmatpush.bf16.xpose.msra.mxu3 %v2865_v42 }
 0x2ed   : > { %829 = vmatpush.bf16.xpose.msra.mxu3 %v2875_v11 }
 0x2fa   : > { %s2169_s21 = spop %2168 }
 0x2fb   : > { %v588_v39 = vstv %s2169_s21  ;;  %s2335_s21 = smov 120  }
 0x2fc   : > { %v590_v35 = vmul.f32 %v588_v39, %v584_v32  ;;  %v722_v32 = vld [vmem:[#allocation2 + $0xc9] sm:$0xff] }
 0x2fd   : > { %v927_v39 = vld [vmem:[#allocation2 + $0xaa] sm:$0xff]  ;;  %v745_v2 = vpack.c.bf16 %v722_v32, %v721_v20 }
 0x2fe   : > { %v591_v30 = vadd.f32 %v590_v35, %v578_v25  ;;  %v952_v59 = vpack.c.bf16 %v928_v45, %v927_v39  ;;  %v941_v35 = vld [vmem:[#allocation2 + $0x152] sm:$0xff]  ;;  %v2037_v25 = vld [vmem:[#allocation2 + $0xc2] sm:$0xff]  ;;  %v919_v20 = vld [vmem:[#allocation2 + $0x4a] sm:$0xff] }
 0x2ff   : > { %v2889_v0 = vsel %vm328_vm1, %v745_v2, 0  ;;  %v935_v32 = vld [vmem:[#allocation2 + $0x10a] sm:$0xff]  ;;  %v936_v39 = vld [vmem:[#allocation2 + $0x112] sm:$0xff]  ;;  %v948_v45 = vpack.c.bf16 %v920_v24, %v919_v20 }
 0x300   : > { %v2892_v5 = vsel %vm328_vm1, %v952_v59, 0  ;;  %830 = vmatpush.bf16.xpose.msra.mxu3 %v2889_v0  ;;  %v956_v2 = vpack.c.bf16 %v936_v39, %v935_v32 }
 0x301   : > { %1014 = vmatpush.bf16.xpose.msrb.mxu2 %v2892_v5  ;;  %v2955_v59 = vsel %vm328_vm1, %v948_v45, 0 }
 0x302   : > { %s2171_s19 = spop %2170  ;;  %v2958_v60 = vsel %vm328_vm1, %v956_v2, 0 }
 0x303   : > { %v610_v29 = vstv %s2171_s19  ;;  %s2173_s18 = spop %2172  ;;  %s2340_s19 = smov 96  }
 0x304   : > { %v612_v31 = vmul.f32 %v610_v29, %v606_v18  ;;  %v632_v33 = vstv %s2173_s18  ;;  %v942_v18 = vld [vmem:[#allocation2 + $0x15a] sm:$0xff]  ;;  %v2053_v29 = vld [vmem:[#allocation2 + $0x182] sm:$0xff]  ;;  %s2341_s18 = smov 108  }
 0x305   : > { %v634_v36 = vmul.f32 %v632_v33, %v628_v27  ;;  %v2038_v27 = vld [vmem:[#allocation2 + $0xca] sm:$0xff]  ;;  %v951_v33 = vpack.c.bf16 %v926_v10, %v925_v63  ;;  %v934_v63 = vld [vmem:[#allocation2 + $0xfa] sm:$0xff]  ;;  %v947_v10 = vpack.c.bf16 %v918_v3, %v917_v61 }
 0x306   : > { %v613_v34 = vadd.f32 %v612_v31, %v591_v30  ;;  %v2054_v30 = vld [vmem:[#allocation2 + $0x18a] sm:$0xff]  ;;  %v1342_v22 = vpack.c.bf16 %v2038_v27, %v2037_v25  ;;  %v915_v27 = vld [vmem:[#allocation2 + $0x1a] sm:$0xff] }
 0x307   : > { %v1944_v31 = vld [vmem:[%s3139_s6 + $0x8] sm:$0xff]  ;;  %v2908_v37 = vsel %vm328_vm1, %v951_v33, 0 }
 0x308   : > { %v635_v48 = vadd.f32 %v634_v36, %v613_v34  ;;  %1027 = vmatpush.bf16.xpose.msrb.mxu3 %v2897_v19  ;;  %v959_v34 = vpack.c.bf16 %v942_v18, %v941_v35  ;;  %v1350_v36 = vpack.c.bf16 %v2054_v30, %v2053_v29  ;;  %v2914_v23 = vsel %vm328_vm1, %v1342_v22, 0  ;;  %v916_v29 = vld [vmem:[#allocation2 + $0x22] sm:$0xff]  ;;  %v931_v30 = vld [vmem:[#allocation2 + $0xda] sm:$0xff] }
 0x309   : > { %1015 = vmatpush.bf16.xpose.msrb.mxu2 %v2908_v37  ;;  %v955_v35 = vpack.c.bf16 %v934_v63, %v933_v62  ;;  %v2965_v18 = vsel %vm328_vm1, %v947_v10, 0  ;;  %v946_v33 = vpack.c.bf16 %v916_v29, %v915_v27  ;;  %v2072_v27 = vld [vmem:[#allocation2 + $0xe0] sm:$0xff]  ;;  %v2087_v29 = vld [vmem:[#allocation2 + $0x198] sm:$0xff] }
 0x30a   : > { %v648_v54 = vpack.c.bf16 %v635_v48, %v635_v48  ;;  %v2911_v40 = vsel %vm328_vm1, %v959_v34, 0  ;;  %v940_v48 = vld [vmem:[#allocation2 + $0x142] sm:$0xff]  ;;  %v2918_v50 = vsel %vm328_vm1, %v1350_v36, 0 }
 0x30b   : > { %v958_v43 = vpack.c.bf16 %v940_v48, %v939_v46  ;;  %v2968_v25 = vsel %vm328_vm1, %v955_v35, 0  ;;  %v970_v22 = vsel %vm328_vm1, %v946_v33, 0 }
 0x30c   : > { %650 = vst.msk [vmem:[#allocation3] sm:$0xf] %vm649_vm8, %v648_v54  ;;  %v950_v54 = vpack.c.bf16 %v924_v44, %v923_v41  ;;  %v913_v41 = vld [vmem:[#allocation2 + $0x2] sm:$0xff]  ;;  %v914_v44 = vld [vmem:[#allocation2 + $0xa] sm:$0xff] }
 0x30d   : > { %v2931_v55 = vsel %vm328_vm1, %v958_v43, 0  ;;  %v945_v46 = vpack.c.bf16 %v914_v44, %v913_v41  ;;  %v2020_v43 = vld [vmem:[#allocation2 + $0x189] sm:$0xff]  ;;  %v2085_v41 = vld [vmem:[#allocation2 + $0x180] sm:$0xff] }
 0x30e   : > { %v2928_v6 = vsel %vm328_vm1, %v950_v54, 0  ;;  %v2019_v54 = vld [vmem:[#allocation2 + $0x181] sm:$0xff] }
 0x30f   : > { %v967_v48 = vsel %vm328_vm1, %v945_v46, 0  ;;  %v2086_v44 = vld [vmem:[#allocation2 + $0x188] sm:$0xff] }
 0x310   : > { %1028 = vmatpush.bf16.xpose.msrb.mxu3 %v2911_v40 }
 0x311   : > { %1016 = vmatpush.bf16.xpose.msrb.mxu2 %v2928_v6 }
 0x313   : > { %v704_v13 = vld [vmem:[#allocation3] sm:$0xf] }
 0x314   : > { %v754_v51 = vunpack.c.l.b16 %v704_v13  ;;  %1951 = vmatmul.msk.bf16.vlgmr.msrb.gmra.mxu0 %vm328_vm1, %v704_v13  ;;  %1952 = vmatmul.msk.bf16.vlgmr.msrb.gmra.mxu1 %vm328_vm1, %v704_v13  ;;  %v949_v13 = vpack.c.bf16 %v922_v12, %v921_v56  ;;  %v1221_v56 = vpack.c.bf16 %v2020_v43, %v2019_v54  ;;  %v2083_v54 = vld [vmem:[#allocation2 + $0x168] sm:$0xff]  ;;  %v2084_v43 = vld [vmem:[#allocation2 + $0x170] sm:$0xff] }
 0x315   : > { %1404 = vmatpush.bf16.xpose.msrb.mxu0 %v2914_v23  ;;  %1417 = vmatpush.bf16.xpose.msrb.mxu1 %v2918_v50 }
 0x316   : > { %v2882_v52 = vpack.c.b16 %v754_v51, %v754_v51  ;;  %v957_v51 = vpack.c.bf16 %v938_v58, %v937_v57  ;;  %v2942_v15 = vsel %vm328_vm1, %v949_v13, 0  ;;  %v1273_v12 = vsel %vm328_vm1, %v1221_v56, 0  ;;  %v2121_v58 = vld [vmem:[#allocation2 + $0x199] sm:$0xff] }
 0x318   : > { %1222 = vrot.lane.b32.xlu1 %v2882_v52, %s2334_s20  ;;  %961 = vrot.lane.b32.xlu0 %v2882_v52, %s2335_s21  ;;  %v2945_v17 = vsel %vm328_vm1, %v957_v51, 0 }
 0x319   : > { %756 = vrot.lane.b32.xlu2 %v2882_v52, %s2336_s22  ;;  %1029 = vmatpush.bf16.xpose.msrb.mxu3 %v2931_v55  ;;  %s2342_s22 = smov 2  }
 0x31a   : > { %1017 = vmatpush.bf16.xpose.msrb.mxu2 %v2942_v15 }
 0x31d   : > { %1405 = vmatpush.bf16.xpose.msrb.mxu0 %v2892_v5  ;;  %1418 = vmatpush.bf16.xpose.msrb.mxu1 %v2897_v19 }
 0x320   : > { %1483 = vrot.lane.b32.xlu1 %v2882_v52, %s2337_s8  ;;  %595 = vrot.lane.b32.xlu0 %v1944_v31, %s2338_s10  ;;  %s2344_s10 = smov 3   ;;  %v932_v31 = vld [vmem:[#allocation2 + $0xe2] sm:$0xff] }
 0x321   : > { %1093 = vrot.lane.b32.xlu2 %v2882_v52, %s2339_s12  ;;  %1030 = vmatpush.bf16.xpose.msrb.mxu3 %v2945_v17  ;;  %v954_v34 = vpack.c.bf16 %v932_v31, %v931_v30  ;;  %v2088_v30 = vld [vmem:[#allocation2 + $0x1a0] sm:$0xff] }
 0x322   : > { %1018 = vmatpush.bf16.xpose.msrb.mxu2 %v2955_v59  ;;  %v1482_v31 = vpack.c.bf16 %v2088_v30, %v2087_v29 }
 0x323   : > { %v2976_v36 = vsel %vm328_vm1, %v954_v34, 0  ;;  %v2069_v34 = vld [vmem:[#allocation2 + $0xc0] sm:$0xff] }
 0x324   : > { %v1534_v33 = vsel %vm328_vm1, %v1482_v31, 0  ;;  %v2060_v31 = vld [vmem:[#allocation2 + $0x50] sm:$0xff] }
 0x325   : > { %1406 = vmatpush.bf16.xpose.msrb.mxu0 %v2908_v37  ;;  %1419 = vmatpush.bf16.xpose.msrb.mxu1 %v2911_v40 }
 0x328   : > { %1741 = vrot.lane.b32.xlu1 %v2882_v52, %s2340_s19  ;;  %s2165_s19 = sshll.u32 %s2320_s27, 4 }
 0x329   : > { %1351 = vrot.lane.b32.xlu2 %v2882_v52, %s2341_s18  ;;  %1031 = vmatpush.bf16.xpose.msrb.mxu3 %v2958_v60  ;;  %s1846_s21 = scalar_lea.hbm %s3140_s7, %s2165_s19 }
 0x32a   : > { %1019 = vmatpush.bf16.xpose.msrb.mxu2 %v2965_v18  ;;  %s1850_s30 = sshll.u32 %s1846_s21, 4  ;;  %s1851_s30 = int_to_ptr.hbm [resolvable:$true] %s1850_s30 }
 0x32b   : > { %s2264_s8 = sshra.s32 %s1851_s30, 4  ;;  %s2265_s8 = int_to_ptr.hbm [resolvable:$true] %s2264_s8 }
 0x32c   : > { %p2271_p1 = scmp.lt.s32.totalorder %s2265_s8, %s3140_s7 }
 0x32d   : > { %1407 = vmatpush.bf16.xpose.msrb.mxu0 %v2928_v6  ;;  %1420 = vmatpush.bf16.xpose.msrb.mxu1 %v2931_v55 }
 0x330   : > { %617 = vrot.lane.b32.xlu1 %v1946_v7, %s2342_s22  ;;  %v2122_v7 = vld [vmem:[#allocation2 + $0x1a1] sm:$0xff] }
 0x331   : > { %1612 = vrot.lane.b32.xlu2 %v2882_v52, %s2343_s23  ;;  %v1948_v52 = vld [vmem:[%s3139_s6 + $0x18] sm:$0xff]  ;;  %1032 = vmatpush.bf16.xpose.msrb.mxu3 %v2968_v25  ;;  %v1611_v13 = vpack.c.bf16 %v2122_v7, %v2121_v58  ;;  %v2081_v7 = vld [vmem:[#allocation2 + $0x150] sm:$0xff] }
 0x332   : > { %1020 = vmatpush.bf16.xpose.msrb.mxu2 %v970_v22  ;;  %v2066_v58 = vld [vmem:[#allocation2 + $0x98] sm:$0xff] }
 0x333   : > { %v1663_v20 = vsel %vm328_vm1, %v1611_v13, 0 }
 0x335   : > { %1408 = vmatpush.bf16.xpose.msrb.mxu0 %v2942_v15  ;;  %1421 = vmatpush.bf16.xpose.msrb.mxu1 %v2945_v17 }
 0x339   : > { %639 = vrot.lane.b32.xlu2 %v1948_v52, %s2344_s10  ;;  %1033 = vmatpush.bf16.xpose.msrb.mxu3 %v2976_v36  ;;  %v3014_v52 = vperm.slane %v2734_v9, 0  ;;  %s2266_s10 = scalar_lea.hbm %s2265_s8, 16 }
 0x33a   : > { %1021 = vmatpush.bf16.xpose.msrb.mxu2 %v967_v48  ;;  %v2068_v48 = vld [vmem:[#allocation2 + $0xb0] sm:$0xff]  ;;  %p2267_p12 = scmp.ne.s32.totalorder %s2265_s8, %s2266_s10 }
 0x33c   : > { %p2268_p13 = pnand %p2267_p12, %p2426_p4 }
 0x33d   : > { %1409 = vmatpush.bf16.xpose.msrb.mxu0 %v2955_v59  ;;  %1422 = vmatpush.bf16.xpose.msrb.mxu1 %v2958_v60 }
 0x33e   : > { %p2269_p0 = pneg %p2268_p13 }
 0x341   : > { %1034 = vmatpush.bf16.xpose.msrb.mxu3 %v2914_v23 }
 0x345   : > { %1410 = vmatpush.bf16.xpose.msrb.mxu0 %v2965_v18  ;;  %1423 = vmatpush.bf16.xpose.msrb.mxu1 %v2968_v25 }
 0x34d   : > { %1411 = vmatpush.bf16.xpose.msrb.mxu0 %v970_v22  ;;  %1424 = vmatpush.bf16.xpose.msrb.mxu1 %v2976_v36  ;;  %v2070_v22 = vld [vmem:[#allocation2 + $0xc8] sm:$0xff] }
 0x373   : > { %v757_v57 = vpop.permute.xlu2 %756 }
 0x374   : > { %1949 = vmatmul.msk.bf16.vlgmr.msra.gmra.mxu2 %vm328_vm1, %v757_v57  ;;  %1950 = vmatmul.msk.bf16.vlgmr.msra.gmra.mxu3 %vm328_vm1, %v757_v57  ;;  %v2065_v57 = vld [vmem:[#allocation2 + $0x90] sm:$0xff] }
 0x375   : > { %1275 = vmatpush.bf16.xpose.msra.mxu2 %v2889_v0  ;;  %1288 = vmatpush.bf16.xpose.msra.mxu3 %v1273_v12 }
 0x37b   : > { %v1094_v51 = vpop.permute.xlu2 %1093 }
 0x37c   : > { %1987 = vmatmul.msk.bf16.vlgmr.msra.gmra.mxu0 %vm328_vm1, %v1094_v51  ;;  %1988 = vmatmul.msk.bf16.vlgmr.msra.gmra.mxu1 %vm328_vm1, %v1094_v51 }
 0x37d   : > { %1276 = vmatpush.bf16.xpose.msra.mxu2 %v2799_v14  ;;  %1289 = vmatpush.bf16.xpose.msra.mxu3 %v2804_v16 }
 0x37e   : > { %1665 = vmatpush.bf16.xpose.msra.mxu0 %v2875_v11  ;;  %1678 = vmatpush.bf16.xpose.msra.mxu1 %v1663_v20 }
 0x383   : > { %v1352_v24 = vpop.permute.xlu2 %1351 }
 0x385   : > { %1277 = vmatpush.bf16.xpose.msra.mxu2 %v2810_v47  ;;  %1290 = vmatpush.bf16.xpose.msra.mxu3 %v2814_v49 }
 0x386   : > { %1666 = vmatpush.bf16.xpose.msra.mxu0 %v2889_v0  ;;  %1679 = vmatpush.bf16.xpose.msra.mxu1 %v1273_v12 }
 0x38a   : > { %v1223_v32 = vpop.permute.xlu1 %1222  ;;  %v962_v39 = vpop.permute.xlu0 %961 }
 0x38b   : > { %v2999_v45 = vpop.permute.xlu2 %1612  ;;  %1953 = vmatmul.msk.bf16.vlgmr.msrb.gmra.mxu2 %vm328_vm1, %v962_v39  ;;  %1954 = vmatmul.msk.bf16.vlgmr.msrb.gmra.mxu3 %vm328_vm1, %v962_v39  ;;  %v2079_v39 = vld [vmem:[#allocation2 + $0x138] sm:$0xff] }
 0x38c   : > { %2055 = vmatmul.msk.bf16.vlgmr.msrb.gmra.mxu0 %vm328_vm1, %v1352_v24  ;;  %2056 = vmatmul.msk.bf16.vlgmr.msrb.gmra.mxu1 %vm328_vm1, %v1352_v24  ;;  %v2063_v24 = vld [vmem:[#allocation2 + $0x78] sm:$0xff] }
 0x38d   : > { %1278 = vmatpush.bf16.xpose.msra.mxu2 %v2819_v1  ;;  %1291 = vmatpush.bf16.xpose.msra.mxu3 %v2822_v4 }
 0x38e   : > { %1667 = vmatpush.bf16.xpose.msra.mxu0 %v2799_v14  ;;  %1680 = vmatpush.bf16.xpose.msra.mxu1 %v2804_v16 }
 0x391   : > { %v3009_v0 = vpop.f32.mrf.mxu0  ;;  %v3011_v2 = vpop.f32.mrf.mxu1 }
 0x392   : > { %v3016_v61 = vpop.permute.xlu1 %1483  ;;  %v596_v3 = vpop.permute.xlu0 %595 }
 0x393   : > { %v598_v62 = vmul.f32 %v596_v3, %v3014_v52  ;;  %v640_v63 = vpop.permute.xlu2 %639  ;;  %v2080_v3 = vld [vmem:[#allocation2 + $0x140] sm:$0xff] }
 0x394   : > { %v642_v10 = vmul.f32 %v640_v63, %v3014_v52  ;;  %v1478_v63 = vpack.c.bf16 %v2080_v3, %v2079_v39 }
 0x395   : > { %1279 = vmatpush.bf16.xpose.msra.mxu2 %v2832_v26  ;;  %1292 = vmatpush.bf16.xpose.msra.mxu3 %v2836_v21 }
 0x396   : > { %1668 = vmatpush.bf16.xpose.msra.mxu0 %v2810_v47  ;;  %1681 = vmatpush.bf16.xpose.msra.mxu1 %v2814_v49  ;;  %v2071_v49 = vld [vmem:[#allocation2 + $0xd8] sm:$0xff] }
 0x397   : > { %600 = vrot.lane.b32.xlu0 %v598_v62, %s2332_s16  ;;  %644 = vrot.lane.b32.xlu2 %v642_v10, %s2331_s15  ;;  %v1522_v10 = vsel %vm328_vm1, %v1478_v63, 0 }
 0x399   : > { %v898_v9 = vpop.f32.mrf.mxu0  ;;  %v911_v14 = vpop.f32.mrf.mxu1 }
 0x39a   : > { %v3026_v16 = vpop.permute.xlu1 %1741  ;;  %v2061_v9 = vld [vmem:[#allocation2 + $0x60] sm:$0xff]  ;;  %v2062_v14 = vld [vmem:[#allocation2 + $0x68] sm:$0xff] }
 0x39d   : > { %1280 = vmatpush.bf16.xpose.msra.mxu2 %v2851_v38  ;;  %1293 = vmatpush.bf16.xpose.msra.mxu3 %v2855_v28 }
 0x39e   : > { %1669 = vmatpush.bf16.xpose.msra.mxu0 %v2819_v1  ;;  %1682 = vmatpush.bf16.xpose.msra.mxu1 %v2822_v4  ;;  %v1474_v1 = vpack.c.bf16 %v2072_v27, %v2071_v49  ;;  %v1469_v49 = vpack.c.bf16 %v2062_v14, %v2061_v9 }
 0x3a0   : > { %v1510_v4 = vsel %vm328_vm1, %v1474_v1, 0  ;;  %v1495_v29 = vsel %vm328_vm1, %v1469_v49, 0  ;;  %v2059_v1 = vld [vmem:[#allocation2 + $0x48] sm:$0xff] }
 0x3a2   : > { %v618_v35 = vpop.permute.xlu1 %617 }
 0x3a3   : > { %v620_v47 = vmul.f32 %v618_v35, %v3014_v52  ;;  %v2077_v35 = vld [vmem:[#allocation2 + $0x120] sm:$0xff] }
 0x3a5   : > { %1281 = vmatpush.bf16.xpose.msra.mxu2 %v2861_v53  ;;  %1294 = vmatpush.bf16.xpose.msra.mxu3 %v2865_v42 }
 0x3a6   : > { %1670 = vmatpush.bf16.xpose.msra.mxu0 %v2832_v26  ;;  %1683 = vmatpush.bf16.xpose.msra.mxu1 %v2836_v21  ;;  %v1473_v26 = vpack.c.bf16 %v2070_v22, %v2069_v34  ;;  %v1481_v21 = vpack.c.bf16 %v2086_v44, %v2085_v41  ;;  %v1468_v34 = vpack.c.bf16 %v2060_v31, %v2059_v1 }
 0x3a7   : > { %622 = vrot.lane.b32.xlu1 %v620_v47, %s2333_s17  ;;  %v2078_v47 = vld [vmem:[#allocation2 + $0x128] sm:$0xff]  ;;  %s283_s17 = sand.u32 1, %s2312_s25  }
 0x3a8   : > { %v1507_v46 = vsel %vm328_vm1, %v1473_v26, 0  ;;  %v1477_v27 = vpack.c.bf16 %v2078_v47, %v2077_v35  ;;  %v1492_v41 = vsel %vm328_vm1, %v1468_v34, 0  ;;  %v2057_v26 = vld [vmem:[#allocation2 + $0x30] sm:$0xff]  ;;  %s1936_s12 = sshll.u32 %s283_s17, 4  ;;  %s1833_s27 = scalar_lea.sflag [#allocation6], %s283_s17 }
 0x3a9   : > { %s285_s22 = scalar_lea.vmem [#allocation5], %s1936_s12  ;;  %s2270_s12 = scalar_lea.hbm %s3140_s7, 32 }
 0x3aa   : > { %v1519_v30 = vsel %vm328_vm1, %v1477_v27, 0  ;;  %s1848_s23 = sshll.u32 %s285_s22, 4  ;;  %p2272_p2 = scmp.lt.s32.totalorder %s2270_s12, %s2266_s10  ;;  %s1849_s23 = int_to_ptr.vmem [resolvable:$true] %s1848_s23 }
 0x3ac   : > { %p2273_p3 = por %p2272_p2, %p2271_p1 }
 0x3ad   : > { %1282 = vmatpush.bf16.xpose.msra.mxu2 %v2871_v8  ;;  %1295 = vmatpush.bf16.xpose.msra.mxu3 %v2875_v11  ;;  %v1531_v8 = vsel %vm328_vm1, %v1481_v21, 0  ;;  %v2067_v11 = vld [vmem:[#allocation2 + $0xa8] sm:$0xff]  ;;  %v2058_v21 = vld [vmem:[#allocation2 + $0x38] sm:$0xff] }
 0x3ae   : > { %1671 = vmatpush.bf16.xpose.msra.mxu0 %v2851_v38  ;;  %1684 = vmatpush.bf16.xpose.msra.mxu1 %v2855_v28  ;;  %v1472_v38 = vpack.c.bf16 %v2068_v48, %v2067_v11  ;;  %v1480_v28 = vpack.c.bf16 %v2084_v43, %v2083_v54  ;;  %v2155_v11 = vld [vmem:[#allocation2 + $0x19a] sm:$0xff]  ;;  %v2156_v48 = vld [vmem:[#allocation2 + $0x1a2] sm:$0xff]  ;;  %v1467_v54 = vpack.c.bf16 %v2058_v21, %v2057_v26  ;;  %p2274_p5 = pnand %p2273_p3, %p2269_p0 }
 0x3b0   : > { %v1504_v56 = vsel %vm328_vm1, %v1472_v38, 0  ;;  %v1528_v12 = vsel %vm328_vm1, %v1480_v28, 0  ;;  %v1740_v38 = vpack.c.bf16 %v2156_v48, %v2155_v11  ;;  %v1489_v28 = vsel %vm328_vm1, %v1467_v54, 0 }
 0x3b4   : > { %2021 = vmatmul.msk.bf16.vlgmr.msra.gmra.mxu2 %vm328_vm1, %v1223_v32  ;;  %2022 = vmatmul.msk.bf16.vlgmr.msra.gmra.mxu3 %vm328_vm1, %v1223_v32  ;;  %v2064_v32 = vld [vmem:[#allocation2 + $0x80] sm:$0xff] }
 0x3b5   : > { %1536 = vmatpush.bf16.xpose.msrb.mxu2 %v1510_v4  ;;  %1549 = vmatpush.bf16.xpose.msrb.mxu3 %v1534_v33  ;;  %v1470_v62 = vpack.c.bf16 %v2064_v32, %v2063_v24  ;;  %v2075_v4 = vld [vmem:[#allocation2 + $0x108] sm:$0xff]  ;;  %v2076_v33 = vld [vmem:[#allocation2 + $0x110] sm:$0xff] }
 0x3b6   : > { %1672 = vmatpush.bf16.xpose.msra.mxu0 %v2861_v53  ;;  %1685 = vmatpush.bf16.xpose.msra.mxu1 %v2865_v42  ;;  %v2082_v53 = vld [vmem:[#allocation2 + $0x158] sm:$0xff]  ;;  %v1471_v42 = vpack.c.bf16 %v2066_v58, %v2065_v57  ;;  %v1476_v22 = vpack.c.bf16 %v2076_v33, %v2075_v4 }
 0x3b7   : > { %v1479_v13 = vpack.c.bf16 %v2082_v53, %v2081_v7 }
 0x3b8   : > { %v1501_v51 = vsel %vm328_vm1, %v1471_v42, 0  ;;  %v1516_v44 = vsel %vm328_vm1, %v1476_v22, 0 }
 0x3b9   : > { %v1525_v20 = vsel %vm328_vm1, %v1479_v13, 0 }
 0x3bd   : > { %1537 = vmatpush.bf16.xpose.msrb.mxu2 %v1507_v46  ;;  %1550 = vmatpush.bf16.xpose.msrb.mxu3 %v1531_v8  ;;  %v2073_v46 = vld [vmem:[#allocation2 + $0xf0] sm:$0xff]  ;;  %v2074_v8 = vld [vmem:[#allocation2 + $0xf8] sm:$0xff] }
 0x3be   : > { %2123 = vmatmul.msk.bf16.vlgmr.msra.gmra.mxu0 %vm328_vm1, %v2999_v45  ;;  %2124 = vmatmul.msk.bf16.vlgmr.msra.gmra.mxu1 %vm328_vm1, %v2999_v45  ;;  %v1498_v45 = vsel %vm328_vm1, %v1470_v62, 0  ;;  %v1475_v43 = vpack.c.bf16 %v2074_v8, %v2073_v46 }
 0x3c5   : > { %1538 = vmatpush.bf16.xpose.msrb.mxu2 %v1504_v56  ;;  %1551 = vmatpush.bf16.xpose.msrb.mxu3 %v1528_v12  ;;  %v1513_v56 = vsel %vm328_vm1, %v1475_v43, 0  ;;  %v1792_v12 = vsel %vm328_vm1, %v1740_v38, 0 }
 0x3cd   : > { %1539 = vmatpush.bf16.xpose.msrb.mxu2 %v1501_v51  ;;  %1552 = vmatpush.bf16.xpose.msrb.mxu3 %v1525_v20  ;;  %v2345_v51 = vmov 0  }
 0x3ce   : > { %2245 = vset.pattern.permute.xlu0 %v2345_v51 }
 0x3d5   : > { %1540 = vmatpush.bf16.xpose.msrb.mxu2 %v1498_v45  ;;  %1553 = vmatpush.bf16.xpose.msrb.mxu3 %v1522_v10 }
 0x3dd   : > { %1541 = vmatpush.bf16.xpose.msrb.mxu2 %v1495_v29  ;;  %1554 = vmatpush.bf16.xpose.msrb.mxu3 %v1519_v30 }
 0x3e5   : > { %1542 = vmatpush.bf16.xpose.msrb.mxu2 %v1492_v41  ;;  %1555 = vmatpush.bf16.xpose.msrb.mxu3 %v1516_v44 }
 0x3ed   : > { %1543 = vmatpush.bf16.xpose.msrb.mxu2 %v1489_v28  ;;  %1556 = vmatpush.bf16.xpose.msrb.mxu3 %v1513_v56 }
 0x3f1   : > { %v645_v10 = vpop.permute.xlu2 %644 }
 0x3f4   : > { %2089 = vmatmul.msk.bf16.vlgmr.msrb.gmra.mxu2 %vm328_vm1, %v3016_v61  ;;  %2090 = vmatmul.msk.bf16.vlgmr.msrb.gmra.mxu3 %vm328_vm1, %v3016_v61 }
 0x3f5   : > { %1794 = vmatpush.bf16.xpose.msra.mxu2 %v2976_v36  ;;  %1807 = vmatpush.bf16.xpose.msra.mxu3 %v1792_v12 }
 0x3f7   : > { %v819_v57 = vpop.f32.mrf.mxu2  ;;  %v832_v58 = vpop.f32.mrf.mxu3 }
 0x3f9   : > { %v1155_v7 = vpop.f32.mrf.mxu0  ;;  %v1168_v53 = vpop.f32.mrf.mxu1 }
 0x3fd   : > { %1795 = vmatpush.bf16.xpose.msra.mxu2 %v2914_v23  ;;  %1808 = vmatpush.bf16.xpose.msra.mxu3 %v2918_v50  ;;  %v910_v50 = vadd.f32 %v3011_v2, %v832_v58 }
 0x3ff   : > { %v821_v36 = vpop.f32.mrf.mxu2  ;;  %v834_v42 = vpop.f32.mrf.mxu3 }
 0x401   : > { %v1157_v13 = vpop.f32.mrf.mxu0  ;;  %v1170_v61 = vpop.f32.mrf.mxu1 }
 0x405   : > { %1796 = vmatpush.bf16.xpose.msra.mxu2 %v2892_v5  ;;  %1809 = vmatpush.bf16.xpose.msra.mxu3 %v2897_v19  ;;  %v897_v19 = vadd.f32 %v3009_v0, %v819_v57 }
 0x409   : > { %v1413_v23 = vpop.f32.mrf.mxu0  ;;  %v1426_v5 = vpop.f32.mrf.mxu1 }
 0x40a   : > { %v601_v62 = vpop.permute.xlu0 %600 }
 0x40d   : > { %1797 = vmatpush.bf16.xpose.msra.mxu2 %v2908_v37  ;;  %1810 = vmatpush.bf16.xpose.msra.mxu3 %v2911_v40 }
 0x40e   : > { %v1023_v20 = vpop.f32.mrf.mxu2  ;;  %v1036_v24 = vpop.f32.mrf.mxu3 }
 0x40f   : > { %v1040_v32 = vadd.f32 %v1023_v20, %v897_v19  ;;  %v1041_v37 = vadd.f32 %v1036_v24, %v910_v50 }
 0x411   : > { %v1415_v40 = vpop.f32.mrf.mxu0  ;;  %v1172_v39 = vadd.f32 %v1155_v7, %v1040_v32  ;;  %v1173_v3 = vadd.f32 %v1168_v53, %v1041_v37 }
 0x415   : > { %1798 = vmatpush.bf16.xpose.msra.mxu2 %v2928_v6  ;;  %1811 = vmatpush.bf16.xpose.msra.mxu3 %v2931_v55  ;;  %v1428_v6 = vpop.f32.mrf.mxu1  ;;  %v579_v55 = vld [vmem:[%s3139_s6] sm:$0xff] }
 0x416   : > { %v581_v0 = vmul.f32 %v3014_v52, %v579_v55  ;;  %v1025_v2 = vpop.f32.mrf.mxu2  ;;  %v1038_v63 = vpop.f32.mrf.mxu3 }
 0x418   : > { %v603_v45 = vadd.f32 %v601_v62, %v581_v0 }
 0x41d   : > { %1799 = vmatpush.bf16.xpose.msra.mxu2 %v2942_v15  ;;  %1812 = vmatpush.bf16.xpose.msra.mxu3 %v2945_v17  ;;  %v623_v15 = vpop.permute.xlu1 %622 }
 0x41e   : > { %v625_v17 = vadd.f32 %v623_v15, %v603_v45 }
 0x420   : > { %v647_v9 = vadd.f32 %v645_v10, %v625_v17 }
 0x422   : > { %652 = vst.msk [vmem:[#allocation4] sm:$0xff] %vm651_vm9, %v647_v9 }
 0x425   : > { %1800 = vmatpush.bf16.xpose.msra.mxu2 %v2955_v59  ;;  %1813 = vmatpush.bf16.xpose.msra.mxu3 %v2958_v60 }
 0x429   : > { %v1822_v14 = vld [vmem:[#allocation4] sm:$0xff] }
 0x42a   : > { %1825 = vperm.xlu0 %2245, %v1822_v14  }
 0x42d   : > { %1801 = vmatpush.bf16.xpose.msra.mxu2 %v2965_v18  ;;  %1814 = vmatpush.bf16.xpose.msra.mxu3 %v2968_v25 }
 0x434   : > { %2158 = vmatmul.msk.bf16.vlgmr.msra.gmra.mxu3 %vm328_vm1, %v3026_v16  ;;  %2157 = vmatmul.msk.bf16.vlgmr.msra.gmra.mxu2 %vm328_vm1, %v3026_v16 }
 0x437   : > { %v1284_v59 = vpop.f32.mrf.mxu2  ;;  %v1297_v60 = vpop.f32.mrf.mxu3 }
 0x438   : > { %v1301_v52 = vadd.f32 %v1284_v59, %v1172_v39  ;;  %v1302_v35 = vadd.f32 %v1297_v60, %v1173_v3 }
 0x43a   : > { %v1430_v27 = vadd.f32 %v1413_v23, %v1301_v52  ;;  %v1431_v18 = vadd.f32 %v1426_v5, %v1302_v35 }
 0x43b   : > { %v1674_v47 = vpop.f32.mrf.mxu0  ;;  %v1687_v49 = vpop.f32.mrf.mxu1 }
 0x43f   : > { %v1286_v29 = vpop.f32.mrf.mxu2  ;;  %v1299_v25 = vpop.f32.mrf.mxu3 }
 0x443   : > { %v1676_v30 = vpop.f32.mrf.mxu0  ;;  %v1689_v1 = vpop.f32.mrf.mxu1 }
 0x477   : > { %v1545_v31 = vpop.f32.mrf.mxu2  ;;  %v1558_v4 = vpop.f32.mrf.mxu3 }
 0x478   : > { %v1562_v33 = vadd.f32 %v1545_v31, %v1430_v27  ;;  %v1563_v34 = vadd.f32 %v1558_v4, %v1431_v18 }
 0x47a   : > { %v1691_v22 = vadd.f32 %v1674_v47, %v1562_v33  ;;  %v1692_v16 = vadd.f32 %v1687_v49, %v1563_v34 }
 0x47f   : > { %v1547_v41 = vpop.f32.mrf.mxu2  ;;  %v1560_v44 = vpop.f32.mrf.mxu3 }
 0x49c   : > { %v1826_v11 = vpop.permute.xlu0 %1825 }
 0x4b7   : > { %v1803_v26 = vpop.f32.mrf.mxu2  ;;  %v1816_v21 = vpop.f32.mrf.mxu3 }
 0x4b8   : > { %v1820_v46 = vadd.f32 %v1803_v26, %v1691_v22  ;;  %v1821_v8 = vadd.f32 %v1816_v21, %v1692_v16 }
 0x4ba   : > { %v1828_v48 = vadd.f32 %v1826_v11, %v1820_v46  ;;  %v1829_v54 = vadd.f32 %v1826_v11, %v1821_v8 }
 0x4bc   : > { %1830 = vst [vmem:[%s285_s22] sm:$0xff] %v1828_v48 }
 0x4bd   : > { %1831 = vst [vmem:[%s285_s22 + $0x8] sm:$0xff] %v1829_v54 }
 0x4be   : > { %2277 = shalt.err (!%p2274_p5)
}
 0x4bf   : > { %2174 = dma.vmem_to_hbm [thread:$0]  (%p2426_p4), %s1849_s23, 256, %s1851_s30, %s1833_s27   ;;  %v1805_v43 = vpop.f32.mrf.mxu2  ;;  %v1818_v38 = vpop.f32.mrf.mxu3 }
 0x4c0 PF: > { %p2180_p6 = scmp.ge.s32.totalorder %s2328_s29, 2  ;;  %s1862_s17 = sand.u32 1, %s2308_s24  }
 0x4c1   : > { %s1863_s20 = scalar_lea.sflag [#allocation6], %s1862_s17 }
 0x4c2   : > { %p2177_p7 = pnand %p2180_p6, %p2433_p8 }
 0x4c4   : > { %p2178_p9 = pneg %p2177_p7 }
 0x4c6   : > { %2303 = dma.done.wait (%p2178_p9), %s1863_s20, 256  }
 0x4c7   : > { %2305 = vsyncadd (%p2178_p9), %s1863_s20, 4294967040  ;;  %s20_s29 = sadd.s32 1, %s2328_s29   ;;  %s3143_s24 = smov %s2312_s25 }
 0x4c8   : > { %p17_p10 = scmp.ge.s32.totalorder %s20_s29, 4   ;;  %s3144_s25 = smov %s2316_s26 }
 0x4c9   : > { %s3145_s26 = smov %s2439_s14  ;;  %s3146_s27 = smov %s2324_s28 }
 0x4ca   : > { %s3147_s28 = smov %s3149_s9  ;;  %19 = sbr.rel (!%p17_p10) target bundleno = 4 (0x4), region = 97 }
 0x4cf   :  { %1869 = vsyncpa [#allocation6], 1 }
 0x4d0   :  { %1871 = vsyncpa [#allocation6 + $0x1], 1 }

</bundles_post_ra>
